<compile_context>
chip_gen: v6e
topology: v6e:2x2x1
jax: 0.10.0
libtpu: 0.0.40
codegen_flags: <defaults>
</compile_context>

<pallas_src>
import jax
import jax.numpy as jnp
from jax.experimental import pallas as pl
from jax.experimental.pallas import tpu as pltpu


def _round_up(x, m):
    return ((x + m - 1) // m) * m


def _discriminator_kernel(adj_ref, emb_ref,
                          w1a_ref, w1e_ref, b1_ref,
                          w2_ref, b2_ref,
                          w3_ref, b3_ref,
                          w4_ref, b4_ref,
                          out_ref,
                          h1_ref):
    """One (batch tile i, adjacency K tile k) grid step.

    Layer 1 is accumulated over k into the VMEM scratch h1_ref; layers 2-4 and
    the lane-dense output store only run on the last K step.
    """
    bf16 = jnp.bfloat16
    k = pl.program_id(1)
    nk = pl.num_programs(1)

    # ---- Layer 1 (split matmul replaces concat([adj, emb], 1) @ W1) ----
    @pl.when(k == 0)
    def _init():
        h1_ref[...] = (
            jnp.dot(emb_ref[...].astype(bf16), w1e_ref[...],
                    preferred_element_type=jnp.float32)
            + b1_ref[...])

    h1_ref[...] += jnp.dot(adj_ref[...].astype(bf16), w1a_ref[...],
                           preferred_element_type=jnp.float32)

    # ---- Layers 2-4 once the K reduction over itemCount is complete ----
    @pl.when(k == nk - 1)
    def _finalize():
        h = jnp.maximum(h1_ref[...], 0.0)
        h = jnp.dot(h.astype(bf16), w2_ref[...],
                    preferred_element_type=jnp.float32) + b2_ref[...]
        h = jnp.maximum(h, 0.0)
        h = jnp.dot(h.astype(bf16), w3_ref[...],
                    preferred_element_type=jnp.float32) + b3_ref[...]
        h = jnp.maximum(h, 0.0)                       # (block_b, 16) f32
        # Layer 4 in row form: (1,16) @ (16, block_b) -> (1, block_b).
        # Keeps the output store lane-dense; the tiny M=1 matmul cost is noise.
        w4 = w4_ref[...].astype(jnp.float32)          # (1, 16)
        out_ref[...] = (jnp.dot(w4, h.T, preferred_element_type=jnp.float32)
                        + b4_ref[0, 0])


def _vmem_budget_bytes(block_b, block_k, emb_dim):
    dbl = 2  # pipelined blocks are double-buffered by default
    tiles = dbl * (block_b * block_k * 4        # adj tile (f32)
                   + block_b * emb_dim * 4      # emb tile (f32)
                   + block_k * 1024 * 2         # W1a tile (bf16)
                   + block_b * 4)               # output row tile (f32)
    resident = dbl * (emb_dim * 1024 * 2 + 1024 * 4        # W1e, b1
                      + 1024 * 128 * 2 + 128 * 4           # W2, b2
                      + 128 * 16 * 2 + 16 * 4 + 16 * 2)    # W3, b3, W4
    scratch = block_b * 1024 * 4                # layer-1 f32 accumulator
    return tiles + resident + scratch


def discriminator_forward(adj, emb, params, *, block_b=None, block_k_max=1024):
    """adj: (B, itemCount), emb: (B, out_feat_shape) -> (B, 1) f32 logits."""
    w1a, w1e, b1, w2, b2, w3, b3, w4_row, b4 = params
    B, item_count = adj.shape
    _, emb_dim = emb.shape

    # --- Batch tile: multiple of 128 (lane-dense output row). When B is small,
    # shrink so the "parallel" axis has >=2 steps and both v7x TCs get work.
    if block_b is None:
        block_b = 512
        while block_b > 128 and B <= block_b:
            block_b //= 2
    block_b = max(128, _round_up(block_b, 128))
    B_pad = _round_up(B, block_b)
    if B_pad != B:
        adj = jnp.pad(adj, ((0, B_pad - B), (0, 0)))
        emb = jnp.pad(emb, ((0, B_pad - B), (0, 0)))

    # --- K tile over itemCount (layer-1 reduction axis). Single untiled step
    # when itemCount is small; otherwise 128-aligned tiles + zero padding.
    block_k_max = max(128, _round_up(block_k_max, 128))
    if item_count <= block_k_max:
        block_k = item_count
        item_pad = item_count
    else:
        block_k = block_k_max
        item_pad = _round_up(item_count, block_k)
        if item_pad != item_count:
            adj = jnp.pad(adj, ((0, 0), (0, item_pad - item_count)))
            w1a = jnp.pad(w1a, ((0, item_pad - item_count), (0, 0)))

    n_b = B_pad // block_b
    n_k = item_pad // block_k
    vmem = pltpu.MemorySpace.VMEM

    def resident(shape):
        # Full-array block, constant index map: DMA'd once, stays in VMEM.
        return pl.BlockSpec(shape, lambda i, k: (0,) * len(shape),
                            memory_space=vmem)

    in_specs = [
        pl.BlockSpec((block_b, block_k), lambda i, k: (i, k), memory_space=vmem),
        pl.BlockSpec((block_b, emb_dim), lambda i, k: (i, 0), memory_space=vmem),
        pl.BlockSpec((block_k, 1024), lambda i, k: (k, 0), memory_space=vmem),
        resident(w1e.shape), resident(b1.shape),
        resident(w2.shape), resident(b2.shape),
        resident(w3.shape), resident(b3.shape),
        resident(w4_row.shape),
        pl.BlockSpec(memory_space=pltpu.MemorySpace.SMEM),   # b4 scalar
    ]
    # Lane-dense output slab: one (1, block_b) row per batch tile.
    out_spec = pl.BlockSpec((1, block_b), lambda i, k: (0, i), memory_space=vmem)

    flops = 2 * B_pad * ((item_pad + emb_dim) * 1024 + 1024 * 128 + 128 * 16 + 16)
    weight_bytes = sum(int(w.size) * w.dtype.itemsize
                       for w in (w1a, w1e, b1, w2, b2, w3, b3, w4_row, b4))
    bytes_accessed = (int(adj.size) * adj.dtype.itemsize
                      + int(emb.size) * emb.dtype.itemsize
                      + weight_bytes + B_pad * 4)

    vmem_limit = min(
        max(int(1.5 * _vmem_budget_bytes(block_b, block_k, emb_dim)),
            32 * 1024 * 1024),
        112 * 1024 * 1024)

    out = pl.pallas_call(
        _discriminator_kernel,
        out_shape=jax.ShapeDtypeStruct((1, B_pad), jnp.float32),
        grid=(n_b, n_k),
        in_specs=in_specs,
        out_specs=out_spec,
        scratch_shapes=[pltpu.VMEM((block_b, 1024), jnp.float32)],
        compiler_params=pltpu.CompilerParams(
            dimension_semantics=("parallel", "arbitrary"),
            vmem_limit_bytes=vmem_limit),
        cost_estimate=pl.CostEstimate(flops=flops, transcendentals=0,
                                      bytes_accessed=bytes_accessed),
    )(adj, emb, w1a, w1e, b1, w2, b2, w3, b3, w4_row, b4)

    return out[0, :B].reshape(B, 1)


def init_params(key, item_count, out_feat_shape):
    """Deterministic synthetic weights.

    Matmul weights are stored (in, out) in bf16 (W1 pre-split into adjacency /
    embedding halves so layer 1 needs no concat; W4 as a (1, 16) row); biases f32.
    """
    d_in1 = item_count + out_feat_shape
    dims = [(d_in1, 1024), (1024, 128), (128, 16), (16, 1)]
    ws, bs = [], []
    for d_in, d_out in dims:
        key, kw, kb = jax.random.split(key, 3)
        bound = 1.0 / (d_in ** 0.5)   # same scale as PyTorch's default Linear init
        ws.append(jax.random.uniform(kw, (d_in, d_out), jnp.float32, -bound, bound))
        bs.append(jax.random.uniform(kb, (1, d_out), jnp.float32, -bound, bound))
    w1, w2, w3, w4 = ws
    b1, b2, b3, b4 = bs

    bf16 = jnp.bfloat16
    w1a = w1[:item_count].astype(bf16)          # (itemCount, 1024)
    w1e = w1[item_count:].astype(bf16)          # (out_feat_shape, 1024)
    w2 = w2.astype(bf16)                        # (1024, 128)
    w3 = w3.astype(bf16)                        # (128, 16)
    w4_row = w4.T.astype(bf16)                  # (1, 16)
    b4 = b4.reshape(1, 1).astype(jnp.float32)   # SMEM scalar
    return (w1a, w1e, b1, w2, b2, w3, b3, w4_row, b4)


def reference_forward(adj, emb, params):
    """Pure-JAX reference of the same math (bf16 weights/acts, f32 accumulate)."""
    w1a, w1e, b1, w2, b2, w3, b3, w4_row, b4 = params
    bf16 = jnp.bfloat16
    h = (jnp.dot(adj.astype(bf16), w1a, preferred_element_type=jnp.float32)
         + jnp.dot(emb.astype(bf16), w1e, preferred_element_type=jnp.float32) + b1)
    h = jnp.maximum(h, 0.0)
    h = jnp.maximum(
        jnp.dot(h.astype(bf16), w2, preferred_element_type=jnp.float32) + b2, 0.0)
    h = jnp.maximum(
        jnp.dot(h.astype(bf16), w3, preferred_element_type=jnp.float32) + b3, 0.0)
    return jnp.dot(h, w4_row.astype(jnp.float32).T) + b4[0, 0]


if __name__ == "__main__":
    key = jax.random.PRNGKey(0)

    # Case 1: small problem -> single grid step on both axes (block_k == itemCount).
    item_count, out_feat_shape, batch = 64, 32, 8
    k_adj, k_emb, k_par, key = jax.random.split(key, 4)
    params = init_params(k_par, item_count, out_feat_shape)
    adj = jax.random.normal(k_adj, (batch, item_count), jnp.float32)
    emb = jax.random.normal(k_emb, (batch, out_feat_shape), jnp.float32)
    out = jax.block_until_ready(discriminator_forward(adj, emb, params))
    ref = reference_forward(adj, emb, params)
    assert out.shape == (batch, 1)
    assert jnp.allclose(out, ref, atol=1e-2, rtol=1e-2)

    # Case 2: non-multiple batch + itemCount > K tile -> grid = (2 batch, 3 K),
    # exercising padding, the "parallel" batch axis and the layer-1 K reduction.
    item_count2, batch2 = 300, 200
    k_adj2, k_emb2, k_par2, key = jax.random.split(key, 4)
    params2 = init_params(k_par2, item_count2, out_feat_shape)
    adj2 = jax.random.normal(k_adj2, (batch2, item_count2), jnp.float32)
    emb2 = jax.random.normal(k_emb2, (batch2, out_feat_shape), jnp.float32)
    out2 = jax.block_until_ready(
        discriminator_forward(adj2, emb2, params2, block_b=128, block_k_max=128))
    ref2 = reference_forward(adj2, emb2, params2)
    assert out2.shape == (batch2, 1)
    assert jnp.allclose(out2, ref2, atol=1e-2, rtol=1e-2)

    print("KERNEL_OK")
</pallas_src>

<mosaic_0001>
module attributes {stable_mosaic.version = 11 : i64} {
  func.func @_discriminator_kernel(%arg0: i32, %arg1: i32, %arg2: memref<128x64xf32, #tpu.memory_space<vmem>>, %arg3: memref<128x32xf32, #tpu.memory_space<vmem>>, %arg4: memref<64x1024xbf16, #tpu.memory_space<vmem>>, %arg5: memref<32x1024xbf16, #tpu.memory_space<vmem>>, %arg6: memref<1x1024xf32, #tpu.memory_space<vmem>>, %arg7: memref<1024x128xbf16, #tpu.memory_space<vmem>>, %arg8: memref<1x128xf32, #tpu.memory_space<vmem>>, %arg9: memref<128x16xbf16, #tpu.memory_space<vmem>>, %arg10: memref<1x16xf32, #tpu.memory_space<vmem>>, %arg11: memref<1x16xbf16, #tpu.memory_space<vmem>>, %arg12: memref<1x1xf32, #tpu.memory_space<smem>>, %arg13: memref<1x128xf32, #tpu.memory_space<vmem>>, %arg14: memref<128x1024xf32, #tpu.memory_space<vmem>>) attributes {dimension_semantics = [#tpu.dimension_semantics<parallel>, #tpu.dimension_semantics<arbitrary>], iteration_bounds = array<i64: 1, 1>, scalar_prefetch = 0 : i64, scratch_operands = 1 : i64, tpu.core_type = #tpu.core_type<tc>, window_params = [{transform_indices = @transform_0, window_bounds = array<i64: 128, 64>}, {transform_indices = @transform_1, window_bounds = array<i64: 128, 32>}, {transform_indices = @transform_2, window_bounds = array<i64: 64, 1024>}, {pipeline_mode = #tpu.pipeline_mode<synchronous>, transform_indices = @transform_3, window_bounds = array<i64: 32, 1024>}, {pipeline_mode = #tpu.pipeline_mode<synchronous>, transform_indices = @transform_4, window_bounds = array<i64: 1, 1024>}, {pipeline_mode = #tpu.pipeline_mode<synchronous>, transform_indices = @transform_5, window_bounds = array<i64: 1024, 128>}, {pipeline_mode = #tpu.pipeline_mode<synchronous>, transform_indices = @transform_6, window_bounds = array<i64: 1, 128>}, {pipeline_mode = #tpu.pipeline_mode<synchronous>, transform_indices = @transform_7, window_bounds = array<i64: 128, 16>}, {pipeline_mode = #tpu.pipeline_mode<synchronous>, transform_indices = @transform_8, window_bounds = array<i64: 1, 16>}, {pipeline_mode = #tpu.pipeline_mode<synchronous>, transform_indices = @transform_9, window_bounds = array<i64: 1, 16>}, {transform_indices = @transform_10, window_bounds = array<i64: 1, 1>}, {transform_indices = @transform_11, window_bounds = array<i64: 1, 128>}]} {
    %c0_i32 = arith.constant 0 : i32
    %0 = arith.cmpi eq, %arg1, %c0_i32 : i32
    %1 = arith.extui %0 : i1 to i32
    %c0_i32_0 = arith.constant 0 : i32
    %2 = arith.cmpi ne, %1, %c0_i32_0 : i32
    scf.if %2 {
      %c0_10 = arith.constant 0 : index
      %c0_11 = arith.constant 0 : index
      %13 = vector.load %arg3[%c0_10, %c0_11] : memref<128x32xf32, #tpu.memory_space<vmem>>, vector<128x32xf32>
      %14 = arith.truncf %13 : vector<128x32xf32> to vector<128x32xbf16>
      %c0_12 = arith.constant 0 : index
      %c0_13 = arith.constant 0 : index
      %15 = vector.load %arg5[%c0_12, %c0_13] : memref<32x1024xbf16, #tpu.memory_space<vmem>>, vector<32x1024xbf16>
      %cst_14 = arith.constant dense<0.000000e+00> : vector<128x1024xf32>
      %16 = tpu.matmul %14, %15, %cst_14 {dimension_numbers = #tpu.dot_dimension_numbers<[1], [0], [0], [1], [0, 0, 1, 1], [], []>} : vector<128x32xbf16>, vector<32x1024xbf16>, vector<128x1024xf32> -> vector<128x1024xf32>
      %c0_15 = arith.constant 0 : index
      %c0_16 = arith.constant 0 : index
      %17 = vector.load %arg6[%c0_15, %c0_16] : memref<1x1024xf32, #tpu.memory_space<vmem>>, vector<1x1024xf32>
      %18 = vector.broadcast %17 : vector<1x1024xf32> to vector<128x1024xf32>
      %19 = arith.addf %16, %18 : vector<128x1024xf32>
      %c0_17 = arith.constant 0 : index
      %c0_18 = arith.constant 0 : index
      %20 = vector.load %arg14[%c0_17, %c0_18] : memref<128x1024xf32, #tpu.memory_space<vmem>>, vector<128x1024xf32>
      tpu.vector_store %arg14[%c0_17, %c0_18], %19 {strides = array<i32>} : memref<128x1024xf32, #tpu.memory_space<vmem>>, vector<128x1024xf32>,
    } else {
    }
    %c0 = arith.constant 0 : index
    %c0_1 = arith.constant 0 : index
    %3 = vector.load %arg14[%c0, %c0_1] : memref<128x1024xf32, #tpu.memory_space<vmem>>, vector<128x1024xf32>
    %c0_2 = arith.constant 0 : index
    %c0_3 = arith.constant 0 : index
    %4 = vector.load %arg2[%c0_2, %c0_3] : memref<128x64xf32, #tpu.memory_space<vmem>>, vector<128x64xf32>
    %5 = arith.truncf %4 : vector<128x64xf32> to vector<128x64xbf16>
    %c0_4 = arith.constant 0 : index
    %c0_5 = arith.constant 0 : index
    %6 = vector.load %arg4[%c0_4, %c0_5] : memref<64x1024xbf16, #tpu.memory_space<vmem>>, vector<64x1024xbf16>
    %cst = arith.constant dense<0.000000e+00> : vector<128x1024xf32>
    %7 = tpu.matmul %5, %6, %cst {dimension_numbers = #tpu.dot_dimension_numbers<[1], [0], [0], [1], [0, 0, 1, 1], [], []>} : vector<128x64xbf16>, vector<64x1024xbf16>, vector<128x1024xf32> -> vector<128x1024xf32>
    %8 = arith.addf %3, %7 : vector<128x1024xf32>
    %c0_6 = arith.constant 0 : index
    %c0_7 = arith.constant 0 : index
    %9 = vector.load %arg14[%c0_6, %c0_7] : memref<128x1024xf32, #tpu.memory_space<vmem>>, vector<128x1024xf32>
    tpu.vector_store %arg14[%c0_6, %c0_7], %8 {strides = array<i32>} : memref<128x1024xf32, #tpu.memory_space<vmem>>, vector<128x1024xf32>,
    %c0_i32_8 = arith.constant 0 : i32
    %10 = arith.cmpi eq, %arg1, %c0_i32_8 : i32
    %11 = arith.extui %10 : i1 to i32
    %c0_i32_9 = arith.constant 0 : i32
    %12 = arith.cmpi ne, %11, %c0_i32_9 : i32
    scf.if %12 {
      %c0_10 = arith.constant 0 : index
      %c0_11 = arith.constant 0 : index
      %13 = vector.load %arg14[%c0_10, %c0_11] : memref<128x1024xf32, #tpu.memory_space<vmem>>, vector<128x1024xf32>
      %cst_12 = arith.constant 0.000000e+00 : f32
      %14 = vector.broadcast %cst_12 : f32 to vector<128x1024xf32>
      %15 = arith.maximumf %13, %14 : vector<128x1024xf32>
      %16 = arith.truncf %15 : vector<128x1024xf32> to vector<128x1024xbf16>
      %c0_13 = arith.constant 0 : index
      %c0_14 = arith.constant 0 : index
      %17 = vector.load %arg7[%c0_13, %c0_14] : memref<1024x128xbf16, #tpu.memory_space<vmem>>, vector<1024x128xbf16>
      %cst_15 = arith.constant dense<0.000000e+00> : vector<128x128xf32>
      %18 = tpu.matmul %16, %17, %cst_15 {dimension_numbers = #tpu.dot_dimension_numbers<[1], [0], [0], [1], [0, 0, 1, 1], [], []>} : vector<128x1024xbf16>, vector<1024x128xbf16>, vector<128x128xf32> -> vector<128x128xf32>
      %c0_16 = arith.constant 0 : index
      %c0_17 = arith.constant 0 : index
      %19 = vector.load %arg8[%c0_16, %c0_17] : memref<1x128xf32, #tpu.memory_space<vmem>>, vector<1x128xf32>
      %20 = vector.broadcast %19 : vector<1x128xf32> to vector<128x128xf32>
      %21 = arith.addf %18, %20 : vector<128x128xf32>
      %cst_18 = arith.constant 0.000000e+00 : f32
      %22 = vector.broadcast %cst_18 : f32 to vector<128x128xf32>
      %23 = arith.maximumf %21, %22 : vector<128x128xf32>
      %24 = arith.truncf %23 : vector<128x128xf32> to vector<128x128xbf16>
      %c0_19 = arith.constant 0 : index
      %c0_20 = arith.constant 0 : index
      %25 = vector.load %arg9[%c0_19, %c0_20] : memref<128x16xbf16, #tpu.memory_space<vmem>>, vector<128x16xbf16>
      %cst_21 = arith.constant dense<0.000000e+00> : vector<128x16xf32>
      %26 = tpu.matmul %24, %25, %cst_21 {dimension_numbers = #tpu.dot_dimension_numbers<[1], [0], [0], [1], [0, 0, 1, 1], [], []>} : vector<128x128xbf16>, vector<128x16xbf16>, vector<128x16xf32> -> vector<128x16xf32>
      %c0_22 = arith.constant 0 : index
      %c0_23 = arith.constant 0 : index
      %27 = vector.load %arg10[%c0_22, %c0_23] : memref<1x16xf32, #tpu.memory_space<vmem>>, vector<1x16xf32>
      %28 = vector.broadcast %27 : vector<1x16xf32> to vector<128x16xf32>
      %29 = arith.addf %26, %28 : vector<128x16xf32>
      %cst_24 = arith.constant 0.000000e+00 : f32
      %30 = vector.broadcast %cst_24 : f32 to vector<128x16xf32>
      %31 = arith.maximumf %29, %30 : vector<128x16xf32>
      %c0_25 = arith.constant 0 : index
      %c0_26 = arith.constant 0 : index
      %32 = vector.load %arg11[%c0_25, %c0_26] : memref<1x16xbf16, #tpu.memory_space<vmem>>, vector<1x16xbf16>
      %33 = arith.extf %32 : vector<1x16xbf16> to vector<1x16xf32>
      %34 = tpu.transpose %31, [1, 0] : vector<128x16xf32> -> vector<16x128xf32>
      %cst_27 = arith.constant dense<0.000000e+00> : vector<1x128xf32>
      %35 = tpu.matmul %33, %34, %cst_27 {dimension_numbers = #tpu.dot_dimension_numbers<[1], [0], [0], [1], [0, 0, 1, 1], [], []>} : vector<1x16xf32>, vector<16x128xf32>, vector<1x128xf32> -> vector<1x128xf32>
      %c0_28 = arith.constant 0 : index
      %c0_29 = arith.constant 0 : index
      %36 = memref.load %arg12[%c0_28, %c0_29] : memref<1x1xf32, #tpu.memory_space<smem>>
      %37 = vector.broadcast %36 : f32 to vector<1x128xf32>
      %38 = arith.addf %35, %37 : vector<1x128xf32>
      %c0_30 = arith.constant 0 : index
      %c0_31 = arith.constant 0 : index
      %39 = vector.load %arg13[%c0_30, %c0_31] : memref<1x128xf32, #tpu.memory_space<vmem>>, vector<1x128xf32>
      tpu.vector_store %arg13[%c0_30, %c0_31], %38 {strides = array<i32>} : memref<1x128xf32, #tpu.memory_space<vmem>>, vector<1x128xf32>,
    } else {
    }
    return
  }
  func.func @transform_0(%arg0: i32, %arg1: i32) -> (i32, i32) {
    %c0_i32 = arith.constant 0 : i32
    return %arg0, %arg1 : i32, i32
  }
  func.func @transform_1(%arg0: i32, %arg1: i32) -> (i32, i32) {
    %c0_i32 = arith.constant 0 : i32
    %c0_i32_0 = arith.constant 0 : i32
    return %arg0, %c0_i32 : i32, i32
  }
  func.func @transform_2(%arg0: i32, %arg1: i32) -> (i32, i32) {
    %c0_i32 = arith.constant 0 : i32
    %c0_i32_0 = arith.constant 0 : i32
    return %arg1, %c0_i32 : i32, i32
  }
  func.func @transform_3(%arg0: i32, %arg1: i32) -> (i32, i32) {
    %c0_i32 = arith.constant 0 : i32
    %c0_i32_0 = arith.constant 0 : i32
    %c0_i32_1 = arith.constant 0 : i32
    return %c0_i32, %c0_i32_0 : i32, i32
  }
  func.func @transform_4(%arg0: i32, %arg1: i32) -> (i32, i32) {
    %c0_i32 = arith.constant 0 : i32
    %c0_i32_0 = arith.constant 0 : i32
    %c0_i32_1 = arith.constant 0 : i32
    return %c0_i32, %c0_i32_0 : i32, i32
  }
  func.func @transform_5(%arg0: i32, %arg1: i32) -> (i32, i32) {
    %c0_i32 = arith.constant 0 : i32
    %c0_i32_0 = arith.constant 0 : i32
    %c0_i32_1 = arith.constant 0 : i32
    return %c0_i32, %c0_i32_0 : i32, i32
  }
  func.func @transform_6(%arg0: i32, %arg1: i32) -> (i32, i32) {
    %c0_i32 = arith.constant 0 : i32
    %c0_i32_0 = arith.constant 0 : i32
    %c0_i32_1 = arith.constant 0 : i32
    return %c0_i32, %c0_i32_0 : i32, i32
  }
  func.func @transform_7(%arg0: i32, %arg1: i32) -> (i32, i32) {
    %c0_i32 = arith.constant 0 : i32
    %c0_i32_0 = arith.constant 0 : i32
    %c0_i32_1 = arith.constant 0 : i32
    return %c0_i32, %c0_i32_0 : i32, i32
  }
  func.func @transform_8(%arg0: i32, %arg1: i32) -> (i32, i32) {
    %c0_i32 = arith.constant 0 : i32
    %c0_i32_0 = arith.constant 0 : i32
    %c0_i32_1 = arith.constant 0 : i32
    return %c0_i32, %c0_i32_0 : i32, i32
  }
  func.func @transform_9(%arg0: i32, %arg1: i32) -> (i32, i32) {
    %c0_i32 = arith.constant 0 : i32
    %c0_i32_0 = arith.constant 0 : i32
    %c0_i32_1 = arith.constant 0 : i32
    return %c0_i32, %c0_i32_0 : i32, i32
  }
  func.func @transform_10(%arg0: i32, %arg1: i32) -> (i32, i32) {
    %c0_i32 = arith.constant 0 : i32
    %c0_i32_0 = arith.constant 0 : i32
    %c0_i32_1 = arith.constant 0 : i32
    return %c0_i32, %c0_i32_0 : i32, i32
  }
  func.func @transform_11(%arg0: i32, %arg1: i32) -> (i32, i32) {
    %c0_i32 = arith.constant 0 : i32
    %c0_i32_0 = arith.constant 0 : i32
    return %c0_i32, %arg0 : i32, i32
  }
}

</mosaic_0001>

<bundles_post_ra>
// kernel: tpu_custom_call.1
= control target key start
LH: loop header
LB: loop body
LE: loop exit
PB: predicated region body
PF: predicated region fallthrough
CT: control target
= control target key end

     0   :  { %17 = vsyncpa [#allocation5], 0  ;;  %s5506_s0 = inlined_call_operand.vmem [shape: f32[128,64], index: 0, kind: input, shape index: {}]   ;;  %s5507_s1 = inlined_call_operand.vmem [shape: f32[128,32], index: 1, kind: input, shape index: {}]   ;;  %s5508_s2 = inlined_call_operand.vmem [shape: bf16[64,1024], index: 2, kind: input, shape index: {}]   ;;  %s5509_s3 = inlined_call_operand.vmem [shape: bf16[32,1024], index: 3, kind: input, shape index: {}]   ;;  %s5510_s4 = inlined_call_operand.vmem [shape: f32[1,1024], index: 4, kind: input, shape index: {}]   ;;  %s5511_s5 = inlined_call_operand.hbm [shape: bf16[1024,128], index: 5, kind: input, shape index: {}]   ;;  %s5512_s6 = inlined_call_operand.vmem [shape: f32[1,128], index: 6, kind: input, shape index: {}]   ;;  %s5513_s7 = inlined_call_operand.vmem [shape: bf16[128,16], index: 7, kind: input, shape index: {}]   ;;  %s5514_s8 = inlined_call_operand.vmem [shape: f32[1,16], index: 8, kind: input, shape index: {}]   ;;  %s5515_s9 = inlined_call_operand.vmem [shape: bf16[1,16], index: 9, kind: input, shape index: {}]   ;;  %s5516_s10 = inlined_call_operand.<no memory space> [shape: f32[1,1], index: 10, kind: input, shape index: {}]   ;;  %s5517_s11 = inlined_call_operand.hbm [shape: f32[1,128], index: 11, kind: output, shape index: {}]  }
   0x1   :  { %18 = vsyncpa [#allocation6], 0  ;;  %s4169_s17 = smov [#allocation4]  }
   0x2   :  { %s34_s18 = sshll.u32 %s4169_s17, 4  ;;  %s35_s18 = int_to_ptr.vmem [resolvable:$true] %s34_s18 }
   0x3   :  { %s4133_s19 = scalar_lea.vmem %s35_s18, 8192  ;;  %p4138_p1 = scmp.lt.s32.totalorder %s35_s18, %s35_s18 }
   0x4   :  { %p4134_p0 = scmp.ne.s32.totalorder %s35_s18, %s4133_s19  ;;  %p4139_p2 = scmp.lt.s32.totalorder %s4133_s19, %s4133_s19 }
   0x6   :  { %p4140_p3 = por %p4139_p2, %p4138_p1 }
   0x8   :  { %p4141_p4 = pnand %p4140_p3, %p4134_p0 }
   0xa   :  { %4144 = shalt.err (!%p4141_p4)
}
   0xb   :  { %s4170_s20 = smov 64   ;;  %s4171_s21 = smov 4  }
   0xc   :  { %40 = dma.hbm_to_vmem [thread:$0]  %s5511_s5, 8192, %s35_s18, [#allocation5], %s4170_s20, %s4170_s20, %s4171_s21  }
   0xd   :  { %4165 = dma.done.wait [#allocation5], 8192  }
   0xe   :  { %4166 = vsyncadd [#allocation5], 4294959104  ;;  %v4172_v0 = vmov 0   ;;  %v91_v1 = vld [vmem:[%s5509_s3 + $0x40] sm:$0xff]  ;;  %v92_v8 = vld [vmem:[%s5509_s3 + $0x48] sm:$0xff]  ;;  %vm221_vm0 = vcmask 261120  }
   0xf   :  { %278 = vmatprep.mubr.bf16.mxu0 %v4172_v0  ;;  %348 = vmatprep.mubr.bf16.mxu1 %v4172_v0  ;;  %v95_v2 = vld [vmem:[%s5509_s3 + $0x60] sm:$0xff]  ;;  %v96_v10 = vld [vmem:[%s5509_s3 + $0x68] sm:$0xff]  ;;  %v73_v13 = vld [vmem:[%s5507_s1 + $0x70] sm:$0xff]  ;;  %vm1170_vm1 = vcmask 523264   ;;  %vm4174_vm2 = vmmov 0   ;;  %vm3345_vm3 = vcmask 130048  }
  0x10   :  { %v83_v3 = vld [vmem:[%s5509_s3] sm:$0xff]  ;;  %v3492_v4 = vcombine.high %v91_v1, %v95_v2  ;;  %v3491_v5 = vcombine.low %v91_v1, %v95_v2  ;;  %v60_v12 = vld [vmem:[%s5507_s1 + $0x8] sm:$0xff]  ;;  %v74_v14 = vld [vmem:[%s5507_s1 + $0x78] sm:$0xff]  ;;  %v3494_v15 = vcombine.high %v92_v8, %v96_v10  ;;  %v3493_v23 = vcombine.low %v92_v8, %v96_v10 }
  0x11   :  { %v87_v6 = vld [vmem:[%s5509_s3 + $0x20] sm:$0xff]  ;;  %v93_v16 = vld [vmem:[%s5509_s3 + $0x50] sm:$0xff]  ;;  %v84_v18 = vld [vmem:[%s5509_s3 + $0x8] sm:$0xff]  ;;  %v4285_v22 = vpack.c.bf16 %v74_v14, %v73_v13 }
  0x12   :  { %v3484_v7 = vcombine.high %v83_v3, %v87_v6  ;;  %258 = vmatprep.subr.bf16.mxu0 %v3492_v4  ;;  %4042 = vmatprep.subr.bf16.mxu1 %v3492_v4  ;;  %v59_v9 = vld [vmem:[%s5507_s1] sm:$0xff]  ;;  %v3483_v11 = vcombine.low %v83_v3, %v87_v6  ;;  %v97_v17 = vld [vmem:[%s5509_s3 + $0x70] sm:$0xff]  ;;  %v88_v19 = vld [vmem:[%s5509_s3 + $0x28] sm:$0xff] }
  0x13   :  { %259 = vmatpush1.bf16.msra.mxu0 %v3491_v5  ;;  %4044 = vmatpush1.bf16.msra.mxu1 %v3491_v5  ;;  %v3496_v20 = vcombine.high %v93_v16, %v97_v17  ;;  %v4283_v21 = vpack.c.bf16 %v60_v12, %v59_v9  ;;  %v3486_v24 = vcombine.high %v84_v18, %v88_v19  ;;  %v85_v25 = vld [vmem:[%s5509_s3 + $0x10] sm:$0xff]  ;;  %v94_v27 = vld [vmem:[%s5509_s3 + $0x58] sm:$0xff]  ;;  %v4322_v39 = vld [vmem:[%s5508_s2 + $0xc0] sm:$0xff] }
  0x14   :  { %260 = vmatprep.subr.bf16.mxu0 %v3484_v7  ;;  %4043 = vmatprep.subr.bf16.mxu1 %v3484_v7  ;;  %v89_v26 = vld [vmem:[%s5509_s3 + $0x30] sm:$0xff]  ;;  %v98_v28 = vld [vmem:[%s5509_s3 + $0x78] sm:$0xff]  ;;  %v3495_v29 = vcombine.low %v93_v16, %v97_v17  ;;  %v3485_v31 = vcombine.low %v84_v18, %v88_v19  ;;  %v4327_v40 = vld [vmem:[%s5508_s2 + $0xe0] sm:$0xff] }
  0x15   :  { %v3488_v30 = vcombine.high %v85_v25, %v89_v26  ;;  %v61_v32 = vld [vmem:[%s5507_s1 + $0x10] sm:$0xff]  ;;  %v62_v33 = vld [vmem:[%s5507_s1 + $0x18] sm:$0xff]  ;;  %v3498_v34 = vcombine.high %v94_v27, %v98_v28  ;;  %v3487_v37 = vcombine.low %v85_v25, %v89_v26  ;;  %v3497_v41 = vcombine.low %v94_v27, %v98_v28  ;;  %v4334_v44 = vld [vmem:[%s5508_s2 + $0xc8] sm:$0xff] }
  0x16   :  { %v86_v35 = vld [vmem:[%s5509_s3 + $0x18] sm:$0xff]  ;;  %v4317_v38 = vpack.c.bf16 %v62_v33, %v61_v32  ;;  %v3556_v43 = vcombine.high %v4322_v39, %v4327_v40  ;;  %v4339_v45 = vld [vmem:[%s5508_s2 + $0xe8] sm:$0xff]  ;;  %v63_v46 = vld [vmem:[%s5507_s1 + $0x20] sm:$0xff]  ;;  %v3555_v2 = vcombine.low %v4322_v39, %v4327_v40 }
  0x17   :  { %261 = vmatpush1.bf16.msra.mxu0 %v3483_v11  ;;  %4045 = vmatpush1.bf16.msra.mxu1 %v3483_v11  ;;  %v90_v36 = vld [vmem:[%s5509_s3 + $0x38] sm:$0xff]  ;;  %v64_v47 = vld [vmem:[%s5507_s1 + $0x28] sm:$0xff]  ;;  %v3558_v49 = vcombine.high %v4334_v44, %v4339_v45  ;;  %v65_v51 = vld [vmem:[%s5507_s1 + $0x30] sm:$0xff]  ;;  %v3557_v18 = vcombine.low %v4334_v44, %v4339_v45  ;;  %s4175_s3 = smov [#allocation7]  }
  0x18   :  { %371 = vmatprep.subr.bf16.mxu1 %v3494_v15  ;;  %484 = vmatprep.subr.bf16.mxu0 %v3496_v20  ;;  %v3490_v42 = vcombine.high %v86_v35, %v90_v36  ;;  %v3489_v48 = vcombine.low %v86_v35, %v90_v36  ;;  %v4355_v50 = vpack.c.bf16 %v64_v47, %v63_v46  ;;  %v66_v52 = vld [vmem:[%s5507_s1 + $0x38] sm:$0xff]  ;;  %v67_v54 = vld [vmem:[%s5507_s1 + $0x40] sm:$0xff]  ;;  %v68_v55 = vld [vmem:[%s5507_s1 + $0x48] sm:$0xff]  ;;  %s3474_s12 = sshll.u32 %s4175_s3, 4  ;;  %s3475_s12 = int_to_ptr.vmem [resolvable:$true] %s3474_s12 }
  0x19   :  { %v4369_v53 = vpack.c.bf16 %v66_v52, %v65_v51  ;;  %v4383_v56 = vpack.c.bf16 %v68_v55, %v67_v54  ;;  %v69_v57 = vld [vmem:[%s5507_s1 + $0x50] sm:$0xff]  ;;  %v70_v58 = vld [vmem:[%s5507_s1 + $0x58] sm:$0xff]  ;;  %v71_v60 = vld [vmem:[%s5507_s1 + $0x60] sm:$0xff]  ;;  %p4150_p6 = scmp.lt.s32.totalorder %s3475_s12, %s3475_s12 }
  0x1a   :  { %3499 = vmatmul.mubr.msk.bf16.vlgmr.msra.gmra.mxu0 %vm221_vm0, %v4283_v21  ;;  %3506 = vmatmul.mubr.msk.bf16.vlgmr.msra.gmra.mxu1 %vm221_vm0, %v4285_v22  ;;  %v4397_v59 = vpack.c.bf16 %v70_v58, %v69_v57  ;;  %v72_v61 = vld [vmem:[%s5507_s1 + $0x68] sm:$0xff]  ;;  %v994_v63 = vld [vmem:[%s5508_s2 + $0x80] sm:$0xff]  ;;  %v4448_v11 = vld [vmem:[%s5508_s2 + $0xd0] sm:$0xff] }
  0x1b   :  { %372 = vmatpush1.bf16.msra.mxu1 %v3493_v23  ;;  %288 = vmatprep.mubr.bf16.mxu0 %v4172_v0  ;;  %v4411_v62 = vpack.c.bf16 %v72_v61, %v71_v60  ;;  %v998_v1 = vld [vmem:[%s5508_s2 + $0xa0] sm:$0xff]  ;;  %v4453_v13 = vld [vmem:[%s5508_s2 + $0xf0] sm:$0xff]  ;;  %v995_v15 = vld [vmem:[%s5508_s2 + $0x88] sm:$0xff] }
  0x1c   :  { %373 = vmatprep.subr.bf16.mxu1 %v3486_v24  ;;  %391 = vmatprep.mubr.bf16.mxu1 %v4172_v0  ;;  %v3548_v3 = vcombine.high %v994_v63, %v998_v1  ;;  %v986_v4 = vld [vmem:[%s5508_s2 + $0x40] sm:$0xff]  ;;  %v3547_v6 = vcombine.low %v994_v63, %v998_v1  ;;  %v999_v16 = vld [vmem:[%s5508_s2 + $0xa8] sm:$0xff]  ;;  %v3560_v17 = vcombine.high %v4448_v11, %v4453_v13  ;;  %v996_v36 = vld [vmem:[%s5508_s2 + $0x90] sm:$0xff] }
  0x1d   :  { %485 = vmatpush1.bf16.msra.mxu0 %v3495_v29  ;;  %v990_v5 = vld [vmem:[%s5508_s2 + $0x60] sm:$0xff]  ;;  %v3550_v19 = vcombine.high %v995_v15, %v999_v16  ;;  %v987_v20 = vld [vmem:[%s5508_s2 + $0x48] sm:$0xff]  ;;  %v3549_v24 = vcombine.low %v995_v15, %v999_v16  ;;  %v4496_v29 = vld [vmem:[%s5508_s2 + $0xd8] sm:$0xff] }
  0x1e   :  { %486 = vmatprep.subr.bf16.mxu0 %v3488_v30  ;;  %v978_v7 = vld [vmem:[%s5508_s2] sm:$0xff]  ;;  %v3540_v8 = vcombine.high %v986_v4, %v990_v5  ;;  %v3539_v10 = vcombine.low %v986_v4, %v990_v5  ;;  %v991_v23 = vld [vmem:[%s5508_s2 + $0x68] sm:$0xff]  ;;  %v4501_v30 = vld [vmem:[%s5508_s2 + $0xf8] sm:$0xff] }
  0x1f   :  { %374 = vmatpush1.bf16.msra.mxu1 %v3485_v31  ;;  %v982_v9 = vld [vmem:[%s5508_s2 + $0x20] sm:$0xff]  ;;  %v3542_v25 = vcombine.high %v987_v20, %v991_v23  ;;  %v979_v26 = vld [vmem:[%s5508_s2 + $0x8] sm:$0xff]  ;;  %v3541_v28 = vcombine.low %v987_v20, %v991_v23  ;;  %v3562_v32 = vcombine.high %v4496_v29, %v4501_v30  ;;  %v988_v40 = vld [vmem:[%s5508_s2 + $0x50] sm:$0xff] }
  0x20   :  { %597 = vmatprep.subr.bf16.mxu1 %v3498_v34  ;;  %v3532_v12 = vcombine.high %v978_v7, %v982_v9  ;;  %v3531_v14 = vcombine.low %v978_v7, %v982_v9  ;;  %v983_v27 = vld [vmem:[%s5508_s2 + $0x28] sm:$0xff]  ;;  %v954_v33 = vld [vmem:[%s5506_s0] sm:$0xff]  ;;  %v980_v47 = vld [vmem:[%s5508_s2 + $0x10] sm:$0xff] }
  0x21   :  { %487 = vmatpush1.bf16.msra.mxu0 %v3487_v37  ;;  %v3533_v31 = vcombine.low %v979_v26, %v983_v27  ;;  %v955_v34 = vld [vmem:[%s5506_s0 + $0x8] sm:$0xff]  ;;  %v1000_v37 = vld [vmem:[%s5508_s2 + $0xb0] sm:$0xff]  ;;  %v958_v51 = vld [vmem:[%s5506_s0 + $0x20] sm:$0xff] }
  0x22   :  { %3500 = vmatmul.mubr.msk.bf16.gmra.mxu0 %vm221_vm0, %v4317_v38  ;;  %3507 = vmatmul.mubr.msk.bf16.vlgmr.msra.gmra.mxu1 %vm221_vm0, %v4283_v21  ;;  %v4537_v35 = vpack.c.bf16 %v955_v34, %v954_v33  ;;  %v3552_v39 = vcombine.high %v996_v36, %v1000_v37  ;;  %v3551_v44 = vcombine.low %v996_v36, %v1000_v37  ;;  %v959_v52 = vld [vmem:[%s5506_s0 + $0x28] sm:$0xff]  ;;  %v1001_v54 = vld [vmem:[%s5508_s2 + $0xb8] sm:$0xff]  ;;  %v960_v60 = vld [vmem:[%s5506_s0 + $0x30] sm:$0xff] }
  0x23   :  { %598 = vmatpush1.bf16.msra.mxu1 %v3497_v41  ;;  %298 = vmatprep.mubr.bf16.mxu0 %v4172_v0  ;;  %v992_v41 = vld [vmem:[%s5508_s2 + $0x70] sm:$0xff]  ;;  %v4591_v55 = vpack.c.bf16 %v959_v52, %v958_v51  ;;  %v989_v58 = vld [vmem:[%s5508_s2 + $0x58] sm:$0xff]  ;;  %v963_v7 = vld [vmem:[%s5506_s0 + $0x48] sm:$0xff] }
  0x24   :  { %401 = vmatprep.mubr.bf16.mxu1 %v4172_v0  ;;  %599 = vmatprep.subr.bf16.mxu1 %v3490_v42  ;;  %v956_v42 = vld [vmem:[%s5506_s0 + $0x10] sm:$0xff]  ;;  %v3544_v45 = vcombine.high %v988_v40, %v992_v41  ;;  %v961_v61 = vld [vmem:[%s5506_s0 + $0x38] sm:$0xff]  ;;  %v966_v15 = vld [vmem:[%s5506_s0 + $0x60] sm:$0xff] }
  0x25   :  { %1203 = vmatprep.subr.bf16.mxu0 %v3556_v43  ;;  %v957_v43 = vld [vmem:[%s5506_s0 + $0x18] sm:$0xff]  ;;  %v4613_v1 = vpack.c.bf16 %v961_v61, %v960_v60  ;;  %v967_v16 = vld [vmem:[%s5506_s0 + $0x68] sm:$0xff] }
  0x26   :  { %v4565_v46 = vpack.c.bf16 %v957_v43, %v956_v42  ;;  %v4054_v23 = vld [vmem:[#allocation4 + $0x38] sm:$0xff]   ;;  %v4073_v42 = vld [vmem:[#allocation4 + $0x50] sm:$0xff]   ;;  %v4075_v51 = vld [vmem:[#allocation4 + $0x48] sm:$0xff]  }
  0x27   :  { %600 = vmatpush1.bf16.msra.mxu1 %v3489_v48  ;;  %v984_v48 = vld [vmem:[%s5508_s2 + $0x30] sm:$0xff]  ;;  %v4069_v33 = vld [vmem:[#allocation4 + $0x58] sm:$0xff]  }
  0x28   :  { %1316 = vmatprep.subr.bf16.mxu1 %v3558_v49  ;;  %v3543_v49 = vcombine.low %v988_v40, %v992_v41  ;;  %v4070_v40 = vld [vmem:[#allocation4 + $0x18] sm:$0xff]   ;;  %v4059_v41 = vld [vmem:[#allocation4 + $0xf0] sm:$0xff]  }
  0x2a   :  { %3501 = vmatmul.mubr.msk.bf16.gmra.mxu0 %vm221_vm0, %v4355_v50  ;;  %3508 = vmatmul.mubr.msk.bf16.gmra.mxu1 %vm221_vm0, %v4317_v38 }
  0x2b   :  { %308 = vmatprep.mubr.bf16.mxu0 %v4172_v0  ;;  %411 = vmatprep.mubr.bf16.mxu1 %v4172_v0 }
  0x32   :  { %3502 = vmatmul.mubr.msk.bf16.gmra.mxu0 %vm221_vm0, %v4369_v53  ;;  %3509 = vmatmul.mubr.msk.bf16.gmra.mxu1 %vm221_vm0, %v4355_v50 }
  0x33   :  { %318 = vmatprep.mubr.bf16.mxu0 %v4172_v0  ;;  %421 = vmatprep.mubr.bf16.mxu1 %v4172_v0 }
  0x3a   :  { %3503 = vmatmul.mubr.msk.bf16.gmra.mxu0 %vm221_vm0, %v4383_v56  ;;  %3510 = vmatmul.mubr.msk.bf16.gmra.mxu1 %vm221_vm0, %v4369_v53 }
  0x3b   :  { %328 = vmatprep.mubr.bf16.mxu0 %v4172_v0  ;;  %431 = vmatprep.mubr.bf16.mxu1 %v4172_v0 }
  0x42   :  { %3504 = vmatmul.mubr.msk.bf16.gmra.mxu0 %vm221_vm0, %v4397_v59  ;;  %3511 = vmatmul.mubr.msk.bf16.gmra.mxu1 %vm221_vm0, %v4383_v56 }
  0x43   :  { %338 = vmatprep.mubr.bf16.mxu0 %v4172_v0  ;;  %441 = vmatprep.mubr.bf16.mxu1 %v4172_v0 }
  0x4a   :  { %3505 = vmatmul.mubr.msk.bf16.gmra.mxu0 %vm221_vm0, %v4411_v62  ;;  %3512 = vmatmul.mubr.msk.bf16.gmra.mxu1 %vm221_vm0, %v4397_v59 }
  0x4b   :  { %451 = vmatprep.mubr.bf16.mxu1 %v4172_v0  ;;  %504 = vmatprep.mubr.bf16.mxu0 %v4172_v0 }
  0x52   :  { %3513 = vmatmul.mubr.msk.bf16.gmra.mxu1 %vm221_vm0, %v4411_v62  ;;  %3515 = vmatmul.mubr.msk.bf16.vlgmr.msra.gmra.mxu0 %vm221_vm0, %v4283_v21 }
  0x53   :  { %461 = vmatprep.mubr.bf16.mxu1 %v4172_v0  ;;  %514 = vmatprep.mubr.bf16.mxu0 %v4172_v0 }
  0x54   :  { %1204 = vmatpush1.bf16.msra.mxu0 %v3555_v2  ;;  %v981_v2 = vld [vmem:[%s5508_s2 + $0x18] sm:$0xff] }
  0x55   :  { %1205 = vmatprep.subr.bf16.mxu0 %v3548_v3  ;;  %v985_v3 = vld [vmem:[%s5508_s2 + $0x38] sm:$0xff] }
  0x56   :  { %v3538_v5 = vcombine.high %v981_v2, %v985_v3 }
  0x58   :  { %1206 = vmatpush1.bf16.msra.mxu0 %v3547_v6  ;;  %v962_v6 = vld [vmem:[%s5506_s0 + $0x40] sm:$0xff] }
  0x59   :  { %1207 = vmatprep.subr.bf16.mxu0 %v3540_v8  ;;  %v3537_v8 = vcombine.low %v981_v2, %v985_v3  ;;  %v4633_v9 = vpack.c.bf16 %v963_v7, %v962_v6  ;;  %v4080_v2 = vld [vmem:[#allocation4] sm:$0xff]   ;;  %v4071_v3 = vld [vmem:[#allocation4 + $0xd8] sm:$0xff]  }
  0x5a   :  { %3514 = vmatmul.mubr.msk.bf16.gmra.mxu1 %vm221_vm0, %v4285_v22  ;;  %3516 = vmatmul.mubr.msk.bf16.gmra.mxu0 %vm221_vm0, %v4317_v38  ;;  %v4072_v7 = vld [vmem:[#allocation4 + $0x98] sm:$0xff]  }
  0x5b   :  { %524 = vmatprep.mubr.bf16.mxu0 %v4172_v0  ;;  %617 = vmatprep.mubr.bf16.mxu1 %v4172_v0 }
  0x5c   :  { %1208 = vmatpush1.bf16.msra.mxu0 %v3539_v10  ;;  %v4053_v10 = vld [vmem:[#allocation4 + $0x78] sm:$0xff]  }
  0x5d   :  { %1209 = vmatprep.subr.bf16.mxu0 %v3532_v12  ;;  %v964_v12 = vld [vmem:[%s5506_s0 + $0x50] sm:$0xff] }
  0x60   :  { %1210 = vmatpush1.bf16.msra.mxu0 %v3531_v14 }
  0x61   :  { %1429 = vmatprep.subr.bf16.mxu0 %v3560_v17  ;;  %v4661_v17 = vpack.c.bf16 %v967_v16, %v966_v15  ;;  %v4078_v16 = vld [vmem:[#allocation4 + $0x90] sm:$0xff]  }
  0x62   :  { %3517 = vmatmul.mubr.msk.bf16.gmra.mxu0 %vm221_vm0, %v4355_v50  ;;  %3523 = vmatmul.mubr.msk.bf16.vlgmr.msra.gmra.mxu1 %vm221_vm0, %v4283_v21  ;;  %v3534_v21 = vcombine.high %v979_v26, %v983_v27  ;;  %v4061_v26 = vld [vmem:[#allocation4 + $0x68] sm:$0xff]  }
  0x63   :  { %1317 = vmatpush1.bf16.msra.mxu1 %v3557_v18  ;;  %534 = vmatprep.mubr.bf16.mxu0 %v4172_v0  ;;  %v968_v18 = vld [vmem:[%s5506_s0 + $0x70] sm:$0xff]  ;;  %v4062_v27 = vld [vmem:[#allocation4 + $0x28] sm:$0xff]  }
  0x64   :  { %627 = vmatprep.mubr.bf16.mxu1 %v4172_v0  ;;  %1318 = vmatprep.subr.bf16.mxu1 %v3550_v19  ;;  %v969_v19 = vld [vmem:[%s5506_s0 + $0x78] sm:$0xff] }
  0x65   :  { %v4675_v20 = vpack.c.bf16 %v969_v19, %v968_v18  ;;  %v4081_v18 = vld [vmem:[#allocation4 + $0xc8] sm:$0xff]  }
  0x67   :  { %1319 = vmatpush1.bf16.msra.mxu1 %v3549_v24  ;;  %v4057_v24 = vld [vmem:[#allocation4 + $0x70] sm:$0xff]  }
  0x68   :  { %1320 = vmatprep.subr.bf16.mxu1 %v3542_v25  ;;  %v4058_v25 = vld [vmem:[#allocation4 + $0x30] sm:$0xff]  }
  0x6a   :  { %3518 = vmatmul.mubr.msk.bf16.gmra.mxu0 %vm221_vm0, %v4369_v53  ;;  %3524 = vmatmul.mubr.msk.bf16.gmra.mxu1 %vm221_vm0, %v4317_v38  ;;  %v3559_v38 = vcombine.low %v4448_v11, %v4453_v13  ;;  %v4055_v11 = vld [vmem:[#allocation4 + $0xf8] sm:$0xff]  }
  0x6b   :  { %544 = vmatprep.mubr.bf16.mxu0 %v4172_v0  ;;  %637 = vmatprep.mubr.bf16.mxu1 %v4172_v0  ;;  %v965_v13 = vld [vmem:[%s5506_s0 + $0x58] sm:$0xff]  ;;  %s4149_s0 = scalar_lea.vmem %s3475_s12, 32 }
  0x6c   :  { %1321 = vmatpush1.bf16.msra.mxu1 %v3541_v28  ;;  %v4647_v14 = vpack.c.bf16 %v965_v13, %v964_v12  ;;  %v4065_v28 = vld [vmem:[#allocation4 + $0x60] sm:$0xff]   ;;  %v4085_v12 = vld [vmem:[#allocation4 + $0x178] sm:$0xff]  }
  0x6d   :  { %1322 = vmatprep.subr.bf16.mxu1 %v3534_v21 }
  0x70   :  { %1323 = vmatpush1.bf16.msra.mxu1 %v3533_v31 }
  0x71   :  { %1542 = vmatprep.subr.bf16.mxu1 %v3562_v32  ;;  %v4066_v32 = vld [vmem:[#allocation4 + $0x20] sm:$0xff]  }
  0x72   :  { %3519 = vmatmul.mubr.msk.bf16.gmra.mxu0 %vm221_vm0, %v4383_v56  ;;  %3525 = vmatmul.mubr.msk.bf16.gmra.mxu1 %vm221_vm0, %v4355_v50  ;;  %v3536_v50 = vcombine.high %v980_v47, %v984_v48 }
  0x73   :  { %554 = vmatprep.mubr.bf16.mxu0 %v4172_v0  ;;  %647 = vmatprep.mubr.bf16.mxu1 %v4172_v0 }
  0x7a   :  { %3520 = vmatmul.mubr.msk.bf16.gmra.mxu0 %vm221_vm0, %v4397_v59  ;;  %3526 = vmatmul.mubr.msk.bf16.gmra.mxu1 %vm221_vm0, %v4369_v53  ;;  %v3535_v53 = vcombine.low %v980_v47, %v984_v48  ;;  %v4060_v48 = vld [vmem:[#allocation4 + $0xb0] sm:$0xff]  }
  0x7b   :  { %564 = vmatprep.mubr.bf16.mxu0 %v4172_v0  ;;  %657 = vmatprep.mubr.bf16.mxu1 %v4172_v0 }
  0x82   :  { %3521 = vmatmul.mubr.msk.bf16.gmra.mxu0 %vm221_vm0, %v4411_v62  ;;  %3527 = vmatmul.mubr.msk.bf16.gmra.mxu1 %vm221_vm0, %v4383_v56  ;;  %v3561_v56 = vcombine.low %v4496_v29, %v4501_v30 }
  0x83   :  { %574 = vmatprep.mubr.bf16.mxu0 %v4172_v0  ;;  %667 = vmatprep.mubr.bf16.mxu1 %v4172_v0 }
  0x8a   :  { %3522 = vmatmul.mubr.msk.bf16.gmra.mxu0 %vm221_vm0, %v4285_v22  ;;  %3528 = vmatmul.mubr.msk.bf16.gmra.mxu1 %vm221_vm0, %v4397_v59  ;;  %v993_v59 = vld [vmem:[%s5508_s2 + $0x78] sm:$0xff] }
  0x8b   :  { %677 = vmatprep.mubr.bf16.mxu1 %v4172_v0  ;;  %1227 = vmatprep.mubr.bf16.mxu0 %v4172_v0  ;;  %v3546_v63 = vcombine.high %v989_v58, %v993_v59  ;;  %v3545_v4 = vcombine.low %v989_v58, %v993_v59  ;;  %v4079_v58 = vld [vmem:[#allocation4 + $0x40] sm:$0xff]  }
  0x92   :  { %3529 = vmatmul.mubr.msk.bf16.gmra.mxu1 %vm221_vm0, %v4411_v62  ;;  %3563 = vmatmul.mubr.msk.bf16.vlgmr.msra.gmra.mxu0 %vm1170_vm1, %v4537_v35 }
  0x93   :  { %687 = vmatprep.mubr.bf16.mxu1 %v4172_v0  ;;  %1237 = vmatprep.mubr.bf16.mxu0 %v4172_v0 }
  0x94   :  { %1430 = vmatpush1.bf16.msra.mxu0 %v3559_v38 }
  0x95   :  { %1431 = vmatprep.subr.bf16.mxu0 %v3552_v39  ;;  %v4056_v39 = vld [vmem:[#allocation4 + $0xb8] sm:$0xff]  }
  0x98   :  { %1432 = vmatpush1.bf16.msra.mxu0 %v3551_v44 }
  0x99   :  { %1433 = vmatprep.subr.bf16.mxu0 %v3544_v45 }
  0x9a   :  { %3530 = vmatmul.mubr.msk.bf16.gmra.mxu1 %vm221_vm0, %v4285_v22  ;;  %3564 = vmatmul.mubr.msk.bf16.gmra.mxu0 %vm1170_vm1, %v4565_v46  ;;  %v997_v22 = vld [vmem:[%s5508_s2 + $0x98] sm:$0xff] }
  0x9b   :  { %1247 = vmatprep.mubr.bf16.mxu0 %v4172_v0  ;;  %1340 = vmatprep.mubr.bf16.mxu1 %v4172_v0  ;;  %v3554_v57 = vcombine.high %v997_v22, %v1001_v54  ;;  %v3553_v62 = vcombine.low %v997_v22, %v1001_v54  ;;  %v4064_v54 = vld [vmem:[#allocation4 + $0xa8] sm:$0xff]  }
  0x9c   :  { %1434 = vmatpush1.bf16.msra.mxu0 %v3543_v49  ;;  %v4074_v49 = vld [vmem:[#allocation4 + $0x10] sm:$0xff]  }
  0x9d   :  { %1435 = vmatprep.subr.bf16.mxu0 %v3536_v50  ;;  %v4063_v50 = vld [vmem:[#allocation4 + $0xe8] sm:$0xff]  }
  0xa0   :  { %1436 = vmatpush1.bf16.msra.mxu0 %v3535_v53 }
  0xa1   :  { %3686 = vmatprep.subr.bf16.mxu0 %v4053_v10 }
  0xa2   :  { %3565 = vmatmul.mubr.msk.bf16.gmra.mxu0 %vm1170_vm1, %v4591_v55  ;;  %3571 = vmatmul.mubr.msk.bf16.vlgmr.msra.gmra.mxu1 %vm1170_vm1, %v4537_v35 }
  0xa3   :  { %1543 = vmatpush1.bf16.msra.mxu1 %v3561_v56  ;;  %1257 = vmatprep.mubr.bf16.mxu0 %v4172_v0  ;;  %v4077_v56 = vld [vmem:[#allocation4 + $0x8] sm:$0xff]  }
  0xa4   :  { %1350 = vmatprep.mubr.bf16.mxu1 %v4172_v0  ;;  %1544 = vmatprep.subr.bf16.mxu1 %v3554_v57  ;;  %v4067_v57 = vld [vmem:[#allocation4 + $0xe0] sm:$0xff]  }
  0xa7   :  { %1545 = vmatpush1.bf16.msra.mxu1 %v3553_v62 }
  0xa8   :  { %1546 = vmatprep.subr.bf16.mxu1 %v3546_v63  ;;  %v4068_v63 = vld [vmem:[#allocation4 + $0xa0] sm:$0xff]  }
  0xaa   :  { %3566 = vmatmul.mubr.msk.bf16.gmra.mxu0 %vm1170_vm1, %v4613_v1  ;;  %3572 = vmatmul.mubr.msk.bf16.gmra.mxu1 %vm1170_vm1, %v4565_v46 }
  0xab   :  { %1267 = vmatprep.mubr.bf16.mxu0 %v4172_v0  ;;  %1360 = vmatprep.mubr.bf16.mxu1 %v4172_v0 }
  0xac   :  { %1547 = vmatpush1.bf16.msra.mxu1 %v3545_v4 }
  0xad   :  { %1548 = vmatprep.subr.bf16.mxu1 %v3538_v5 }
  0xb0   :  { %1549 = vmatpush1.bf16.msra.mxu1 %v3537_v8  ;;  %v4076_v8 = vld [vmem:[#allocation4 + $0xd0] sm:$0xff]  }
  0xb1   :  { %3750 = vmatprep.subr.bf16.mxu1 %v4055_v11 }
  0xb2   :  { %3567 = vmatmul.mubr.msk.bf16.gmra.mxu0 %vm1170_vm1, %v4633_v9  ;;  %3573 = vmatmul.mubr.msk.bf16.gmra.mxu1 %vm1170_vm1, %v4591_v55 }
  0xb3   :  { %1277 = vmatprep.mubr.bf16.mxu0 %v4172_v0  ;;  %1370 = vmatprep.mubr.bf16.mxu1 %v4172_v0 }
  0xba   :  { %3568 = vmatmul.mubr.msk.bf16.gmra.mxu0 %vm1170_vm1, %v4647_v14  ;;  %3574 = vmatmul.mubr.msk.bf16.gmra.mxu1 %vm1170_vm1, %v4613_v1 }
  0xbb   :  { %1287 = vmatprep.mubr.bf16.mxu0 %v4172_v0  ;;  %1380 = vmatprep.mubr.bf16.mxu1 %v4172_v0 }
  0xc2   :  { %3569 = vmatmul.mubr.msk.bf16.gmra.mxu0 %vm1170_vm1, %v4661_v17  ;;  %3575 = vmatmul.mubr.msk.bf16.gmra.mxu1 %vm1170_vm1, %v4633_v9 }
  0xc3   :  { %1297 = vmatprep.mubr.bf16.mxu0 %v4172_v0  ;;  %1390 = vmatprep.mubr.bf16.mxu1 %v4172_v0 }
  0xca   :  { %3570 = vmatmul.mubr.msk.bf16.gmra.mxu0 %vm1170_vm1, %v4675_v20  ;;  %3576 = vmatmul.mubr.msk.bf16.gmra.mxu1 %vm1170_vm1, %v4647_v14 }
  0xcb   :  { %1400 = vmatprep.mubr.bf16.mxu1 %v4172_v0  ;;  %1453 = vmatprep.mubr.bf16.mxu0 %v4172_v0 }
  0xd2   :  { %3577 = vmatmul.mubr.msk.bf16.gmra.mxu1 %vm1170_vm1, %v4661_v17  ;;  %3579 = vmatmul.mubr.msk.bf16.vlgmr.msra.gmra.mxu0 %vm1170_vm1, %v4537_v35 }
  0xd3   :  { %1410 = vmatprep.mubr.bf16.mxu1 %v4172_v0  ;;  %1463 = vmatprep.mubr.bf16.mxu0 %v4172_v0 }
  0xd4   :  { %3687 = vmatpush3.bf16.msra.mxu0 %v4054_v23 }
  0xd5   :  { %3688 = vmatprep.subr.bf16.mxu0 %v4057_v24 }
  0xd8   :  { %3689 = vmatpush3.bf16.msra.mxu0 %v4058_v25  ;;  %v4082_v25 = vld [vmem:[#allocation4 + $0x88] sm:$0xff]  }
  0xd9   :  { %3690 = vmatprep.subr.bf16.mxu0 %v4061_v26  ;;  %v4083_v26 = vld [vmem:[#allocation4 + $0xc0] sm:$0xff]  }
  0xda   :  { %v4689_v21 = vpop.f32.mrf.mxu0  ;;  %v4691_v29 = vpop.f32.mrf.mxu1  ;;  %3578 = vmatmul.mubr.msk.bf16.gmra.mxu1 %vm1170_vm1, %v4675_v20  ;;  %3580 = vmatmul.mubr.msk.bf16.gmra.mxu0 %vm1170_vm1, %v4565_v46 }
  0xdb   :  { %5518 = vst [vmem:[#allocation10_spill] sm:$0xff] %v4691_v29  ;;  %1473 = vmatprep.mubr.bf16.mxu0 %v4172_v0  ;;  %1566 = vmatprep.mubr.bf16.mxu1 %v4172_v0 }
  0xdc   :  { %v4699_v30 = vpop.f32.mrf.mxu0  ;;  %v4701_v31 = vpop.f32.mrf.mxu1  ;;  %3691 = vmatpush3.bf16.msra.mxu0 %v4062_v27 }
  0xdd   :  { %5519 = vst [vmem:[#allocation11_spill] sm:$0xff] %v4701_v31  ;;  %3692 = vmatprep.subr.bf16.mxu0 %v4065_v28 }
  0xde   :  { %v4703_v34 = vpop.f32.mrf.mxu0  ;;  %v4705_v36 = vpop.f32.mrf.mxu1 }
  0xdf   :  { %5520 = vst [vmem:[#allocation12_spill] sm:$0xff] %v4705_v36 }
  0xe0   :  { %v4707_v37 = vpop.f32.mrf.mxu0  ;;  %v4709_v38 = vpop.f32.mrf.mxu1  ;;  %3693 = vmatpush3.bf16.msra.mxu0 %v4066_v32 }
  0xe1   :  { %5521 = vst [vmem:[#allocation13_spill] sm:$0xff] %v4709_v38  ;;  %3694 = vmatprep.subr.bf16.mxu0 %v4069_v33 }
  0xe2   :  { %v4711_v43 = vpop.f32.mrf.mxu0  ;;  %v4713_v44 = vpop.f32.mrf.mxu1  ;;  %3581 = vmatmul.mubr.msk.bf16.gmra.mxu0 %vm1170_vm1, %v4591_v55  ;;  %3587 = vmatmul.mubr.msk.bf16.vlgmr.msra.gmra.mxu1 %vm1170_vm1, %v4537_v35 }
  0xe3   :  { %1483 = vmatprep.mubr.bf16.mxu0 %v4172_v0  ;;  %1576 = vmatprep.mubr.bf16.mxu1 %v4172_v0 }
  0xe4   :  { %v4721_v45 = vpop.f32.mrf.mxu0  ;;  %v4723_v47 = vpop.f32.mrf.mxu1  ;;  %3751 = vmatpush3.bf16.msra.mxu1 %v4056_v39  ;;  %3695 = vmatpush3.bf16.msra.mxu0 %v4070_v40  ;;  %v4084_v39 = vld [vmem:[#allocation4 + $0x80] sm:$0xff]   ;;  %v4087_v40 = vld [vmem:[#allocation4 + $0x1f8] sm:$0xff]  }
  0xe5   :  { %3752 = vmatprep.subr.bf16.mxu1 %v4059_v41  ;;  %3696 = vmatprep.subr.bf16.mxu0 %v4073_v42 }
  0xe6   :  { %v4725_v52 = vpop.f32.mrf.mxu0  ;;  %v4727_v53 = vpop.f32.mrf.mxu1 }
  0xe8   :  { %v4729_v35 = vpop.f32.mrf.mxu0  ;;  %v4731_v22 = vpop.f32.mrf.mxu1  ;;  %3753 = vmatpush3.bf16.msra.mxu1 %v4060_v48  ;;  %3697 = vmatpush3.bf16.msra.mxu0 %v4074_v49 }
  0xe9   :  { %3754 = vmatprep.subr.bf16.mxu1 %v4063_v50  ;;  %3698 = vmatprep.subr.bf16.mxu0 %v4075_v51 }
  0xea   :  { %v4733_v59 = vpop.f32.mrf.mxu0  ;;  %v4735_v60 = vpop.f32.mrf.mxu1  ;;  %3582 = vmatmul.mubr.msk.bf16.gmra.mxu0 %vm1170_vm1, %v4613_v1  ;;  %3588 = vmatmul.mubr.msk.bf16.gmra.mxu1 %vm1170_vm1, %v4565_v46 }
  0xeb   :  { %1493 = vmatprep.mubr.bf16.mxu0 %v4172_v0  ;;  %1586 = vmatprep.mubr.bf16.mxu1 %v4172_v0 }
  0xec   :  { %v4743_v61 = vpop.f32.mrf.mxu0  ;;  %v4745_v62 = vpop.f32.mrf.mxu1  ;;  %3755 = vmatpush3.bf16.msra.mxu1 %v4064_v54  ;;  %3699 = vmatpush3.bf16.msra.mxu0 %v4077_v56 }
  0xed   :  { %3756 = vmatprep.subr.bf16.mxu1 %v4067_v57  ;;  %3700 = vmatprep.subr.bf16.mxu0 %v4079_v58 }
  0xee   :  { %v4747_v4 = vpop.f32.mrf.mxu0  ;;  %v4749_v5 = vpop.f32.mrf.mxu1 }
  0xf0   :  { %v4751_v46 = vpop.f32.mrf.mxu0  ;;  %v4753_v6 = vpop.f32.mrf.mxu1  ;;  %3757 = vmatpush3.bf16.msra.mxu1 %v4068_v63  ;;  %3701 = vmatpush3.bf16.msra.mxu0 %v4080_v2 }
  0xf1   :  { %3758 = vmatprep.subr.bf16.mxu1 %v4071_v3  ;;  %3814 = vmatprep.subr.bf16.mxu0 %v4085_v12 }
  0xf2   :  { %v4755_v10 = vpop.f32.mrf.mxu0  ;;  %v4757_v11 = vpop.f32.mrf.mxu1  ;;  %3583 = vmatmul.mubr.msk.bf16.gmra.mxu0 %vm1170_vm1, %v4633_v9  ;;  %3589 = vmatmul.mubr.msk.bf16.gmra.mxu1 %vm1170_vm1, %v4591_v55 }
  0xf3   :  { %1503 = vmatprep.mubr.bf16.mxu0 %v4172_v0  ;;  %1596 = vmatprep.mubr.bf16.mxu1 %v4172_v0 }
  0xf4   :  { %v4765_v13 = vpop.f32.mrf.mxu0  ;;  %v4767_v15 = vpop.f32.mrf.mxu1  ;;  %3759 = vmatpush3.bf16.msra.mxu1 %v4072_v7 }
  0xf5   :  { %3760 = vmatprep.subr.bf16.mxu1 %v4076_v8 }
  0xf6   :  { %v4769_v19 = vpop.f32.mrf.mxu0  ;;  %v4771_v23 = vpop.f32.mrf.mxu1 }
  0xf8   :  { %v4773_v24 = vpop.f32.mrf.mxu0  ;;  %v4775_v55 = vpop.f32.mrf.mxu1  ;;  %3761 = vmatpush3.bf16.msra.mxu1 %v4078_v16 }
  0xf9   :  { %3762 = vmatprep.subr.bf16.mxu1 %v4081_v18 }
  0xfa   :  { %v4777_v27 = vpop.f32.mrf.mxu0  ;;  %v4779_v28 = vpop.f32.mrf.mxu1  ;;  %3584 = vmatmul.mubr.msk.bf16.gmra.mxu0 %vm1170_vm1, %v4647_v14  ;;  %3590 = vmatmul.mubr.msk.bf16.gmra.mxu1 %vm1170_vm1, %v4613_v1 }
  0xfb   :  { %1513 = vmatprep.mubr.bf16.mxu0 %v4172_v0  ;;  %1606 = vmatprep.mubr.bf16.mxu1 %v4172_v0 }
  0xfc   :  { %v4787_v32 = vpop.f32.mrf.mxu0  ;;  %v4789_v33 = vpop.f32.mrf.mxu1  ;;  %3763 = vmatpush3.bf16.msra.mxu1 %v4082_v25 }
  0xfd   :  { %3764 = vmatprep.subr.bf16.mxu1 %v4083_v26 }
  0xfe   :  { %v4791_v41 = vpop.f32.mrf.mxu0  ;;  %v4793_v42 = vpop.f32.mrf.mxu1 }
 0x100   :  { %v4795_v48 = vpop.f32.mrf.mxu0  ;;  %v4797_v49 = vpop.f32.mrf.mxu1  ;;  %3765 = vmatpush3.bf16.msra.mxu1 %v4084_v39 }
 0x101   :  { %3878 = vmatprep.subr.bf16.mxu1 %v4087_v40 }
 0x102   :  { %v4799_v1 = vpop.f32.mrf.mxu0  ;;  %v4801_v50 = vpop.f32.mrf.mxu1  ;;  %3585 = vmatmul.mubr.msk.bf16.gmra.mxu0 %vm1170_vm1, %v4661_v17  ;;  %3591 = vmatmul.mubr.msk.bf16.gmra.mxu1 %vm1170_vm1, %v4633_v9 }
 0x103   :  { %1523 = vmatprep.mubr.bf16.mxu0 %v4172_v0  ;;  %1616 = vmatprep.mubr.bf16.mxu1 %v4172_v0 }
 0x104   :  { %v4809_v51 = vpop.f32.mrf.mxu0  ;;  %v4811_v54 = vpop.f32.mrf.mxu1 }
 0x106   :  { %v4813_v56 = vpop.f32.mrf.mxu0  ;;  %v4815_v57 = vpop.f32.mrf.mxu1 }
 0x107   :  { %5522 = vst [vmem:[#allocation14_spill] sm:$0xff] %v4815_v57 }
 0x108   :  { %v4817_v58 = vpop.f32.mrf.mxu0  ;;  %v4819_v63 = vpop.f32.mrf.mxu1 }
 0x109   :  { %5523 = vst [vmem:[#allocation15_spill] sm:$0xff] %v4819_v63 }
 0x10a   :  { %v4821_v2 = vpop.f32.mrf.mxu0  ;;  %v4823_v3 = vpop.f32.mrf.mxu1  ;;  %3586 = vmatmul.mubr.msk.bf16.gmra.mxu0 %vm1170_vm1, %v4675_v20  ;;  %3592 = vmatmul.mubr.msk.bf16.gmra.mxu1 %vm1170_vm1, %v4647_v14 }
 0x10b   :  { %5524 = vst [vmem:[#allocation16_spill] sm:$0xff] %v4823_v3  ;;  %1626 = vmatprep.mubr.bf16.mxu1 %v4172_v0 }
 0x10c   :  { %v4830_v9 = vpop.f32.mrf.mxu0  ;;  %v4832_v7 = vpop.f32.mrf.mxu1 }
 0x10d   :  { %5525 = vst [vmem:[#allocation17_spill] sm:$0xff] %v4832_v7 }
 0x10e   :  { %v4834_v8 = vpop.f32.mrf.mxu0  ;;  %v4836_v12 = vpop.f32.mrf.mxu1 }
 0x10f   :  { %5526 = vst [vmem:[#allocation18_spill] sm:$0xff] %v4834_v8  ;;  %5527 = vst [vmem:[#allocation19_spill] sm:$0xff] %v4836_v12 }
 0x110   :  { %v4838_v16 = vpop.f32.mrf.mxu0  ;;  %v4840_v18 = vpop.f32.mrf.mxu1 }
 0x111   :  { %5528 = vst [vmem:[#allocation20_spill] sm:$0xff] %v4838_v16  ;;  %5529 = vst [vmem:[#allocation21_spill] sm:$0xff] %v4840_v18 }
 0x112   :  { %v4842_v25 = vpop.f32.mrf.mxu1  ;;  %v4844_v26 = vpop.f32.mrf.mxu0  ;;  %3593 = vmatmul.mubr.msk.bf16.gmra.mxu1 %vm1170_vm1, %v4661_v17 }
 0x113   :  { %5530 = vst [vmem:[#allocation22_spill] sm:$0xff] %v4842_v25  ;;  %5531 = vst [vmem:[#allocation23_spill] sm:$0xff] %v4844_v26  ;;  %1636 = vmatprep.mubr.bf16.mxu1 %v4172_v0 }
 0x114   :  { %v4849_v14 = vpop.f32.mrf.mxu1  ;;  %v4851_v39 = vpop.f32.mrf.mxu0 }
 0x115   :  { %5532 = vst [vmem:[#allocation24_spill] sm:$0xff] %v4849_v14  ;;  %5533 = vst [vmem:[#allocation25_spill] sm:$0xff] %v4851_v39 }
 0x116   :  { %v4853_v40 = vpop.f32.mrf.mxu1  ;;  %v4855_v38 = vpop.f32.mrf.mxu0 }
 0x117   :  { %5534 = vst [vmem:[#allocation26_spill] sm:$0xff] %v4853_v40  ;;  %5535 = vst [vmem:[#allocation27_spill] sm:$0xff] %v4855_v38 }
 0x118   :  { %v4857_v12 = vpop.f32.mrf.mxu1  ;;  %v4859_v18 = vpop.f32.mrf.mxu0 }
 0x119   :  { %5536 = vst [vmem:[#allocation28_spill] sm:$0xff] %v4857_v12  ;;  %5537 = vst [vmem:[#allocation29_spill] sm:$0xff] %v4859_v18 }
 0x11a   :  { %v4861_v25 = vpop.f32.mrf.mxu1  ;;  %v4863_v26 = vpop.f32.mrf.mxu0  ;;  %3594 = vmatmul.mubr.msk.bf16.gmra.mxu1 %vm1170_vm1, %v4675_v20 }
 0x11b   :  { %5538 = vst [vmem:[#allocation30_spill] sm:$0xff] %v4861_v25  ;;  %5539 = vst [vmem:[#allocation31_spill] sm:$0xff] %v4863_v26 }
 0x11c   :  { %v4867_v0 = vpop.f32.mrf.mxu1  ;;  %v4869_v17 = vpop.f32.mrf.mxu0 }
 0x11d   :  { %5540 = vst [vmem:[#allocation32_spill] sm:$0xff] %v4867_v0  ;;  %5541 = vst [vmem:[#allocation33_spill] sm:$0xff] %v4869_v17 }
 0x11e   :  { %v4871_v39 = vpop.f32.mrf.mxu1  ;;  %v4873_v40 = vpop.f32.mrf.mxu0 }
 0x11f   :  { %5542 = vst [vmem:[#allocation34_spill] sm:$0xff] %v4871_v39  ;;  %5543 = vst [vmem:[#allocation35_spill] sm:$0xff] %v4873_v40 }
 0x120   :  { %v4875_v38 = vpop.f32.mrf.mxu1  ;;  %v4877_v12 = vpop.f32.mrf.mxu0 }
 0x121   :  { %5544 = vst [vmem:[#allocation36_spill] sm:$0xff] %v4875_v38  ;;  %5545 = vst [vmem:[#allocation37_spill] sm:$0xff] %v4877_v12 }
 0x122   :  { %v4879_v18 = vpop.f32.mrf.mxu0  ;;  %v4881_v25 = vpop.f32.mrf.mxu1 }
 0x123   :  { %5546 = vst [vmem:[#allocation38_spill] sm:$0xff] %v4879_v18  ;;  %5547 = vst [vmem:[#allocation39_spill] sm:$0xff] %v4881_v25 }
 0x124   :  { %v4883_v26 = vpop.f32.mrf.mxu0  ;;  %v4885_v14 = vpop.f32.mrf.mxu1 }
 0x125   :  { %5548 = vst [vmem:[#allocation40_spill] sm:$0xff] %v4883_v26  ;;  %5549 = vst [vmem:[#allocation41_spill] sm:$0xff] %v4885_v14 }
 0x126   :  { %v4887_v20 = vpop.f32.mrf.mxu0  ;;  %v4889_v0 = vpop.f32.mrf.mxu1 }
 0x127   :  { %5550 = vst [vmem:[#allocation42_spill] sm:$0xff] %v4887_v20  ;;  %5551 = vst [vmem:[#allocation43_spill] sm:$0xff] %v4889_v0 }
 0x128   :  { %v4891_v17 = vpop.f32.mrf.mxu0  ;;  %v4893_v39 = vpop.f32.mrf.mxu1 }
 0x129   :  { %5552 = vst [vmem:[#allocation44_spill] sm:$0xff] %v4891_v17  ;;  %5553 = vst [vmem:[#allocation45_spill] sm:$0xff] %v4893_v39 }
 0x12a   :  { %v4895_v40 = vpop.f32.mrf.mxu0  ;;  %v4897_v38 = vpop.f32.mrf.mxu1 }
 0x12b   :  { %5554 = vst [vmem:[#allocation46_spill] sm:$0xff] %v4895_v40  ;;  %5555 = vst [vmem:[#allocation47_spill] sm:$0xff] %v4897_v38 }
 0x12c   :  { %v4899_v12 = vpop.f32.mrf.mxu0  ;;  %v4901_v18 = vpop.f32.mrf.mxu1 }
 0x12d   :  { %5556 = vst [vmem:[#allocation48_spill] sm:$0xff] %v4899_v12  ;;  %5557 = vst [vmem:[#allocation49_spill] sm:$0xff] %v4901_v18 }
 0x12e   :  { %v4903_v25 = vpop.f32.mrf.mxu0  ;;  %v4905_v26 = vpop.f32.mrf.mxu1 }
 0x12f   :  { %5558 = vst [vmem:[#allocation50_spill] sm:$0xff] %v4903_v25  ;;  %5559 = vst [vmem:[#allocation51_spill] sm:$0xff] %v4905_v26 }
 0x130   :  { %v4907_v14 = vpop.f32.mrf.mxu0  ;;  %v4909_v20 = vpop.f32.mrf.mxu1 }
 0x131   :  { %5560 = vst [vmem:[#allocation52_spill] sm:$0xff] %v4907_v14  ;;  %5561 = vst [vmem:[#allocation53_spill] sm:$0xff] %v4909_v20 }
 0x132   :  { %v4911_v0 = vpop.f32.mrf.mxu0  ;;  %v4913_v17 = vpop.f32.mrf.mxu1 }
 0x133   :  { %5562 = vst [vmem:[#allocation54_spill] sm:$0xff] %v4911_v0  ;;  %5563 = vst [vmem:[#allocation55_spill] sm:$0xff] %v4913_v17 }
 0x134   :  { %v4915_v39 = vpop.f32.mrf.mxu0  ;;  %v4917_v40 = vpop.f32.mrf.mxu1 }
 0x135   :  { %5564 = vst [vmem:[#allocation56_spill] sm:$0xff] %v4915_v39  ;;  %5565 = vst [vmem:[#allocation57_spill] sm:$0xff] %v4917_v40 }
 0x136   :  { %v4919_v38 = vpop.f32.mrf.mxu0  ;;  %v4921_v12 = vpop.f32.mrf.mxu1 }
 0x137   :  { %5566 = vst [vmem:[#allocation58_spill] sm:$0xff] %v4919_v38  ;;  %5567 = vst [vmem:[#allocation59_spill] sm:$0xff] %v4921_v12 }
 0x138   :  { %v4923_v18 = vpop.f32.mrf.mxu0  ;;  %v4925_v25 = vpop.f32.mrf.mxu1 }
 0x139   :  { %5568 = vst [vmem:[#allocation60_spill] sm:$0xff] %v4923_v18  ;;  %5569 = vst [vmem:[#allocation61_spill] sm:$0xff] %v4925_v25 }
 0x13a   :  { %v4927_v26 = vpop.f32.mrf.mxu0  ;;  %v4929_v14 = vpop.f32.mrf.mxu1 }
 0x13b   :  { %5570 = vst [vmem:[#allocation62_spill] sm:$0xff] %v4927_v26  ;;  %5571 = vst [vmem:[#allocation63_spill] sm:$0xff] %v4929_v14  ;;  %v101_v14 = vlaneseq }
 0x13c   :  { %v4931_v20 = vpop.f32.mrf.mxu0  ;;  %v4933_v0 = vpop.f32.mrf.mxu1 }
 0x13d   :  { %5572 = vst [vmem:[#allocation64_spill] sm:$0xff] %v4931_v20  ;;  %5573 = vst [vmem:[#allocation65_spill] sm:$0xff] %v4933_v0 }
 0x13e   :  { %v4935_v17 = vpop.f32.mrf.mxu0  ;;  %v4937_v39 = vpop.f32.mrf.mxu1 }
 0x13f   :  { %5574 = vst [vmem:[#allocation66_spill] sm:$0xff] %v4935_v17  ;;  %5575 = vst [vmem:[#allocation67_spill] sm:$0xff] %v4937_v39 }
 0x140   :  { %v4939_v40 = vpop.f32.mrf.mxu0  ;;  %v4941_v38 = vpop.f32.mrf.mxu1 }
 0x141   :  { %5576 = vst [vmem:[#allocation68_spill] sm:$0xff] %v4939_v40  ;;  %5577 = vst [vmem:[#allocation69_spill] sm:$0xff] %v4941_v38  ;;  %v4959_v40 = vshrl.u32 %v101_v14, 7 }
 0x142   :  { %v4943_v12 = vpop.f32.mrf.mxu0  ;;  %v4945_v18 = vpop.f32.mrf.mxu1 }
 0x143   :  { %5578 = vst [vmem:[#allocation70_spill] sm:$0xff] %v4943_v12  ;;  %5579 = vst [vmem:[#allocation71_spill] sm:$0xff] %v4945_v18  ;;  %v107_v14 = vsub.s32 1, %v4959_v40  ;;  %v115_v57 = vsub.s32 3, %v4959_v40 }
 0x144   :  { %v4947_v25 = vpop.f32.mrf.mxu0  ;;  %v4949_v26 = vpop.f32.mrf.mxu1 }
 0x145   :  { %5580 = vst [vmem:[#allocation72_spill] sm:$0xff] %v4947_v25  ;;  %5581 = vst [vmem:[#allocation73_spill] sm:$0xff] %v4949_v26  ;;  %v103_v26 = vsub.s32 0, %v4959_v40 }
 0x146   :  { %v4951_v20 = vpop.f32.mrf.mxu0  ;;  %v4953_v0 = vpop.f32.mrf.mxu1 }
 0x147   :  { %5582 = vst [vmem:[#allocation74_spill] sm:$0xff] %v4951_v20  ;;  %5583 = vst [vmem:[#allocation75_spill] sm:$0xff] %v4953_v0  ;;  %v4973_v0 = vld [vmem:[%s5510_s4] sm:$0xff] }
 0x148   :  { %v4955_v17 = vpop.f32.mrf.mxu0  ;;  %v4957_v39 = vpop.f32.mrf.mxu1  ;;  %v4992_v7 = vrot.slane %v4973_v0, %v107_v14 }
 0x149   :  { %5584 = vst [vmem:[#allocation76_spill] sm:$0xff] %v4955_v17  ;;  %5585 = vst [vmem:[#allocation77_spill] sm:$0xff] %v4957_v39 }
 0x14a   :  { %v4961_v38 = vpop.f32.mrf.mxu0  ;;  %v4963_v12 = vpop.f32.mrf.mxu1  ;;  %v287_v3 = vadd.f32 %v4707_v37, %v4992_v7 }
 0x14b   :  { %5586 = vst [vmem:[#allocation78_spill] sm:$0xff] %v4961_v38  ;;  %5587 = vst [vmem:[#allocation79_spill] sm:$0xff] %v4963_v12 }
 0x14c   :  { %v4965_v18 = vpop.f32.mrf.mxu0  ;;  %v4967_v25 = vpop.f32.mrf.mxu1 }
 0x14d   :  { %5588 = vst [vmem:[#allocation80_spill] sm:$0xff] %v4965_v18  ;;  %5589 = vst [vmem:[#allocation81_spill] sm:$0xff] %v4967_v25  ;;  %v4985_v18 = vrot.slane %v4973_v0, %v103_v26 }
 0x14e   :  { %v4975_v17 = vpop.f32.mrf.mxu0  ;;  %v4977_v39 = vpop.f32.mrf.mxu1 }
 0x14f   :  { %5590 = vst [vmem:[#allocation82_spill] sm:$0xff] %v4975_v17  ;;  %5591 = vst [vmem:[#allocation83_spill] sm:$0xff] %v4977_v39  ;;  %v281_v36 = vadd.f32 %v4689_v21, %v4985_v18 }
 0x150   :  { %v4980_v38 = vpop.f32.mrf.mxu0  ;;  %v4982_v12 = vpop.f32.mrf.mxu1 }
 0x151   :  { %5592 = vst [vmem:[#allocation84_spill] sm:$0xff] %v4980_v38  ;;  %5593 = vst [vmem:[#allocation85_spill] sm:$0xff] %v4982_v12  ;;  %v283_v38 = vadd.f32 %v4699_v30, %v4992_v7  ;;  %v285_v12 = vadd.f32 %v4703_v34, %v4985_v18  ;;  %v111_v30 = vsub.s32 2, %v4959_v40 }
 0x152   :  { %v4987_v25 = vpop.f32.mrf.mxu1  ;;  %v1229_v20 = vpop.f32.mrf.mxu0 }
 0x153   :  { %5594 = vst [vmem:[#allocation86_spill] sm:$0xff] %v4987_v25  ;;  %v1647_v26 = vadd.f32 %v1229_v20, %v281_v36  ;;  %v291_v20 = vadd.f32 %v4711_v43, %v4985_v18 }
 0x154   :  { %v4994_v17 = vpop.f32.mrf.mxu1  ;;  %v1231_v39 = vpop.f32.mrf.mxu0 }
 0x155   :  { %5595 = vst [vmem:[#allocation87_spill] sm:$0xff] %v4994_v17  ;;  %v1648_v21 = vadd.f32 %v1231_v39, %v283_v38  ;;  %v2034_v17 = vmax.f32 %v1647_v26, 0.0  ;;  %v4086_v39 = vld [vmem:[#allocation4 + $0x138] sm:$0xff]   ;;  %v5017_v26 = vrot.slane %v4973_v0, %v111_v30 }
 0x156   :  { %v5000_v31 = vpop.f32.mrf.mxu1  ;;  %v1233_v25 = vpop.f32.mrf.mxu0 }
 0x157   :  { %5596 = vst [vmem:[#allocation88_spill] sm:$0xff] %v5000_v31  ;;  %v1655_v29 = vadd.f32 %v1233_v25, %v285_v12  ;;  %v2035_v31 = vmax.f32 %v1648_v21, 0.0 }
 0x158   :  { %v5004_v14 = vpop.f32.mrf.mxu1  ;;  %v1235_v16 = vpop.f32.mrf.mxu0 }
 0x159   :  { %5597 = vst [vmem:[#allocation89_spill] sm:$0xff] %v5004_v14  ;;  %v2042_v63 = vmax.f32 %v1655_v29, 0.0  ;;  %v1656_v8 = vadd.f32 %v1235_v16, %v287_v3  ;;  %v295_v29 = vadd.f32 %v4725_v52, %v4985_v18 }
 0x15a   :  { %v5008_v34 = vpop.f32.mrf.mxu1  ;;  %v1239_v36 = vpop.f32.mrf.mxu0 }
 0x15b   :  { %5598 = vst [vmem:[#allocation90_spill] sm:$0xff] %v5008_v34  ;;  %v2162_v37 = vpack.c.bf16 %v2042_v63, %v2034_v17  ;;  %v2043_v38 = vmax.f32 %v1656_v8, 0.0  ;;  %v1663_v3 = vadd.f32 %v1239_v36, %v291_v20  ;;  %v293_v34 = vadd.f32 %v4721_v45, %v4992_v7  ;;  %v4089_v63 = vld [vmem:[#allocation4 + $0x170] sm:$0xff]  }
 0x15c   :  { %v5012_v12 = vpop.f32.mrf.mxu1  ;;  %v1241_v25 = vpop.f32.mrf.mxu0  ;;  %v5024_v8 = vrot.slane %v4973_v0, %v115_v57  ;;  %v297_v17 = vadd.f32 %v4729_v35, %v4992_v7  ;;  %v301_v57 = vadd.f32 %v4733_v59, %v4985_v18  ;;  %v398_v59 = vadd.f32 %v4727_v53, %v5017_v26  ;;  %v4097_v53 = vld [vmem:[#allocation4 + $0x160] sm:$0xff]  }
 0x15d   :  { %5599 = vst [vmem:[#allocation91_spill] sm:$0xff] %v5012_v12  ;;  %v2163_v16 = vpack.c.bf16 %v2043_v38, %v2035_v31  ;;  %v1664_v31 = vadd.f32 %v1241_v25, %v293_v34  ;;  %v2050_v36 = vmax.f32 %v1663_v3, 0.0  ;;  %v4090_v38 = vld [vmem:[#allocation4 + $0x130] sm:$0xff]   ;;  %v303_v3 = vadd.f32 %v4743_v61, %v4992_v7 }
 0x15e   :  { %v5021_v14 = vpop.f32.mrf.mxu1  ;;  %v1243_v43 = vpop.f32.mrf.mxu0  ;;  %v396_v34 = vadd.f32 %v4723_v47, %v5024_v8  ;;  %v400_v61 = vadd.f32 %v4731_v22, %v5024_v8  ;;  %v311_v22 = vadd.f32 %v4755_v10, %v4985_v18 }
 0x15f   :  { %5600 = vst [vmem:[#allocation92_spill] sm:$0xff] %v5021_v14  ;;  %v1671_v52 = vadd.f32 %v1243_v43, %v295_v29  ;;  %2777 = vmatprep.mubr.bf16.mxu0 %v2163_v16  ;;  %v394_v14 = vadd.f32 %v4713_v44, %v5017_v26  ;;  %v4093_v29 = vld [vmem:[#allocation4 + $0x168] sm:$0xff]   ;;  %v2051_v16 = vmax.f32 %v1664_v31, 0.0 }
 0x160   :  { %v5028_v21 = vpop.f32.mrf.mxu1  ;;  %v1245_v30 = vpop.f32.mrf.mxu0  ;;  %2778 = vmatmul.mubr.bf16.vlgmr.msra.gmra.mxu0 %v2162_v37 }
 0x161   :  { %v2058_v20 = vmax.f32 %v1671_v52, 0.0  ;;  %v1672_v45 = vadd.f32 %v1245_v30, %v297_v17  ;;  %3815 = vmatpush3.bf16.msra.mxu0 %v4086_v39 }
 0x162   :  { %v1249_v12 = vpop.f32.mrf.mxu0  ;;  %v1342_v35 = vpop.f32.mrf.mxu1  ;;  %3816 = vmatprep.subr.bf16.mxu0 %v4089_v63  ;;  %v305_v63 = vadd.f32 %v4747_v4, %v4985_v18 }
 0x163   :  { %v2170_v25 = vpack.c.bf16 %v2058_v20, %v2050_v36  ;;  %v2059_v37 = vmax.f32 %v1672_v45, 0.0  ;;  %v1679_v39 = vadd.f32 %v1249_v12, %v301_v57  ;;  %v1649_v43 = vadd.f32 %v1342_v35, %v394_v14  ;;  %v4094_v45 = vld [vmem:[#allocation4 + $0x128] sm:$0xff]  }
 0x164   :  { %v1251_v17 = vpop.f32.mrf.mxu0  ;;  %v1344_v44 = vpop.f32.mrf.mxu1  ;;  %v307_v14 = vadd.f32 %v4751_v46, %v4992_v7 }
 0x165   :  { %3817 = vmatpush3.bf16.msra.mxu0 %v4090_v38  ;;  %v1680_v52 = vadd.f32 %v1251_v17, %v303_v3  ;;  %v1650_v30 = vadd.f32 %v1344_v44, %v396_v34  ;;  %v2171_v20 = vpack.c.bf16 %v2059_v37, %v2051_v16  ;;  %v2066_v57 = vmax.f32 %v1679_v39, 0.0  ;;  %v4098_v39 = vld [vmem:[#allocation4 + $0x120] sm:$0xff]  }
 0x166   :  { %v1253_v47 = vpop.f32.mrf.mxu0  ;;  %v1346_v36 = vpop.f32.mrf.mxu1  ;;  %3818 = vmatprep.subr.bf16.mxu0 %v4093_v29  ;;  %v2036_v35 = vmax.f32 %v1649_v43, 0.0  ;;  %v404_v29 = vadd.f32 %v4735_v60, %v5017_v26  ;;  %v313_v60 = vadd.f32 %v4765_v13, %v4992_v7 }
 0x167   :  { %v1687_v12 = vadd.f32 %v1253_v47, %v305_v63  ;;  %v1657_v31 = vadd.f32 %v1346_v36, %v398_v59  ;;  %2785 = vmatprep.mubr.bf16.mxu0 %v2171_v20  ;;  %v2067_v46 = vmax.f32 %v1680_v52, 0.0  ;;  %v2037_v16 = vmax.f32 %v1650_v30, 0.0  ;;  %v4101_v30 = vld [vmem:[#allocation4 + $0x158] sm:$0xff]  }
 0x168   :  { %v1255_v4 = vpop.f32.mrf.mxu0  ;;  %v1348_v38 = vpop.f32.mrf.mxu1  ;;  %2786 = vmatmul.mubr.bf16.gmra.mxu0 %v2170_v25  ;;  %v406_v25 = vadd.f32 %v4745_v62, %v5024_v8  ;;  %v410_v62 = vadd.f32 %v4753_v6, %v5024_v8 }
 0x169   :  { %v2074_v34 = vmax.f32 %v1687_v12, 0.0  ;;  %v2044_v3 = vmax.f32 %v1657_v31, 0.0  ;;  %v1688_v17 = vadd.f32 %v1255_v4, %v307_v14  ;;  %v1658_v37 = vadd.f32 %v1348_v38, %v400_v61  ;;  %3819 = vmatpush3.bf16.msra.mxu0 %v4094_v45  ;;  %v4091_v38 = vld [vmem:[#allocation4 + $0x1f0] sm:$0xff]  }
 0x16a   :  { %v1259_v44 = vpop.f32.mrf.mxu0  ;;  %v1352_v59 = vpop.f32.mrf.mxu1  ;;  %3820 = vmatprep.subr.bf16.mxu0 %v4097_v53  ;;  %v408_v45 = vadd.f32 %v4749_v5, %v5017_v26  ;;  %v315_v14 = vadd.f32 %v4769_v19, %v4985_v18  ;;  %v4088_v53 = vld [vmem:[#allocation4 + $0x1b8] sm:$0xff]   ;;  %v4105_v19 = vld [vmem:[#allocation4 + $0x150] sm:$0xff]  }
 0x16b   :  { %v2178_v43 = vpack.c.bf16 %v2074_v34, %v2066_v57  ;;  %v2164_v63 = vpack.c.bf16 %v2044_v3, %v2036_v35  ;;  %v2075_v47 = vmax.f32 %v1688_v17, 0.0  ;;  %v2045_v36 = vmax.f32 %v1658_v37, 0.0  ;;  %v4102_v34 = vld [vmem:[#allocation4 + $0x118] sm:$0xff]  }
 0x16c   :  { %v1695_v20 = vadd.f32 %v1259_v44, %v311_v22  ;;  %v1665_v61 = vadd.f32 %v1352_v59, %v404_v29  ;;  %v1261_v10 = vpop.f32.mrf.mxu0  ;;  %v1354_v52 = vpop.f32.mrf.mxu1  ;;  %v317_v3 = vadd.f32 %v4773_v24, %v4992_v7  ;;  %v414_v24 = vadd.f32 %v4757_v11, %v5017_v26 }
 0x16d   :  { %v2179_v12 = vpack.c.bf16 %v2075_v47, %v2067_v46  ;;  %v2165_v31 = vpack.c.bf16 %v2045_v36, %v2037_v16  ;;  %v1696_v57 = vadd.f32 %v1261_v10, %v313_v60  ;;  %v1666_v35 = vadd.f32 %v1354_v52, %v406_v25  ;;  %3821 = vmatpush3.bf16.msra.mxu0 %v4098_v39  ;;  %v4092_v39 = vld [vmem:[#allocation4 + $0x1b0] sm:$0xff]  }
 0x16e   :  { %v1263_v13 = vpop.f32.mrf.mxu0  ;;  %v1356_v4 = vpop.f32.mrf.mxu1  ;;  %v2082_v37 = vmax.f32 %v1695_v20, 0.0  ;;  %v2052_v29 = vmax.f32 %v1665_v61, 0.0  ;;  %3822 = vmatprep.subr.bf16.mxu0 %v4101_v30  ;;  %v321_v47 = vadd.f32 %v4777_v27, %v4985_v18  ;;  %v4106_v61 = vld [vmem:[#allocation4 + $0x110] sm:$0xff]   ;;  %v323_v11 = vadd.f32 %v4787_v32, %v4992_v7 }
 0x16f   :  { %v1703_v5 = vadd.f32 %v1263_v13, %v315_v14  ;;  %v1673_v17 = vadd.f32 %v1356_v4, %v408_v45  ;;  %2793 = vmatprep.mubr.bf16.mxu0 %v2179_v12  ;;  %2874 = vmatprep.mubr.bf16.mxu1 %v2165_v31  ;;  %v2083_v36 = vmax.f32 %v1696_v57, 0.0  ;;  %v2053_v25 = vmax.f32 %v1666_v35, 0.0  ;;  %v4096_v4 = vld [vmem:[#allocation4 + $0x1a8] sm:$0xff]  }
 0x170   :  { %v1265_v22 = vpop.f32.mrf.mxu0  ;;  %v1358_v46 = vpop.f32.mrf.mxu1  ;;  %2875 = vmatmul.mubr.bf16.vlgmr.msra.gmra.mxu1 %v2164_v63  ;;  %2794 = vmatmul.mubr.bf16.gmra.mxu0 %v2178_v43  ;;  %v4095_v63 = vld [vmem:[#allocation4 + $0x1e8] sm:$0xff]   ;;  %v416_v45 = vadd.f32 %v4767_v15, %v5024_v8  ;;  %v325_v57 = vadd.f32 %v4791_v41, %v4985_v18  ;;  %v420_v15 = vadd.f32 %v4775_v55, %v5024_v8 }
 0x171   :  { %v2090_v6 = vmax.f32 %v1703_v5, 0.0  ;;  %v2060_v16 = vmax.f32 %v1673_v17, 0.0  ;;  %v1704_v44 = vadd.f32 %v1265_v22, %v317_v3  ;;  %v1674_v59 = vadd.f32 %v1358_v46, %v410_v62  ;;  %3879 = vmatpush3.bf16.msra.mxu1 %v4088_v53  ;;  %3823 = vmatpush3.bf16.msra.mxu0 %v4102_v34  ;;  %v4107_v53 = vld [vmem:[#allocation4 + $0x148] sm:$0xff]   ;;  %v4099_v5 = vld [vmem:[#allocation4 + $0x1e0] sm:$0xff]  }
 0x172   :  { %v1269_v60 = vpop.f32.mrf.mxu0  ;;  %v1362_v20 = vpop.f32.mrf.mxu1  ;;  %3880 = vmatprep.subr.bf16.mxu1 %v4091_v38  ;;  %3824 = vmatprep.subr.bf16.mxu0 %v4105_v19  ;;  %v418_v62 = vadd.f32 %v4771_v23, %v5017_v26  ;;  %v4109_v17 = vld [vmem:[#allocation4 + $0x108] sm:$0xff]   ;;  %v327_v23 = vadd.f32 %v4795_v48, %v4992_v7  ;;  %v424_v48 = vadd.f32 %v4779_v28, %v5017_v26 }
 0x173   :  { %v2186_v10 = vpack.c.bf16 %v2090_v6, %v2082_v37  ;;  %v2172_v52 = vpack.c.bf16 %v2060_v16, %v2052_v29  ;;  %v2091_v30 = vmax.f32 %v1704_v44, 0.0  ;;  %v2061_v43 = vmax.f32 %v1674_v59, 0.0  ;;  %v4111_v37 = vld [vmem:[#allocation4 + $0x140] sm:$0xff]  }
 0x174   :  { %v1711_v27 = vadd.f32 %v1269_v60, %v321_v47  ;;  %v1681_v14 = vadd.f32 %v1362_v20, %v414_v24  ;;  %v1271_v12 = vpop.f32.mrf.mxu0  ;;  %v1364_v31 = vpop.f32.mrf.mxu1  ;;  %v331_v24 = vadd.f32 %v4799_v1, %v4985_v18  ;;  %v4103_v20 = vld [vmem:[#allocation4 + $0x1d8] sm:$0xff]   ;;  %v333_v28 = vadd.f32 %v4809_v51, %v4992_v7 }
 0x175   :  { %v2187_v35 = vpack.c.bf16 %v2091_v30, %v2083_v36  ;;  %v2173_v13 = vpack.c.bf16 %v2061_v43, %v2053_v25  ;;  %3881 = vmatpush3.bf16.msra.mxu1 %v4092_v39  ;;  %v1712_v38 = vadd.f32 %v1271_v12, %v323_v11  ;;  %v1682_v32 = vadd.f32 %v1364_v31, %v416_v45  ;;  %v4100_v39 = vld [vmem:[#allocation4 + $0x1a0] sm:$0xff]  }
 0x176   :  { %v1273_v34 = vpop.f32.mrf.mxu0  ;;  %v1366_v3 = vpop.f32.mrf.mxu1  ;;  %3882 = vmatprep.subr.bf16.mxu1 %v4095_v63  ;;  %3825 = vmatpush3.bf16.msra.mxu0 %v4106_v61  ;;  %v2098_v29 = vmax.f32 %v1711_v27, 0.0  ;;  %v2068_v22 = vmax.f32 %v1681_v14, 0.0  ;;  %v4112_v63 = vld [vmem:[#allocation4 + $0x100] sm:$0xff]   ;;  %v426_v43 = vadd.f32 %v4789_v33, %v5024_v8  ;;  %v428_v14 = vadd.f32 %v4793_v42, %v5017_v26 }
 0x177   :  { %v1719_v19 = vadd.f32 %v1273_v34, %v325_v57  ;;  %v1689_v41 = vadd.f32 %v1366_v3, %v418_v62  ;;  %2801 = vmatprep.mubr.bf16.mxu0 %v2187_v35  ;;  %2882 = vmatprep.mubr.bf16.mxu1 %v2173_v13  ;;  %v2099_v47 = vmax.f32 %v1712_v38, 0.0  ;;  %v2069_v36 = vmax.f32 %v1682_v32, 0.0  ;;  %v4104_v62 = vld [vmem:[#allocation4 + $0x198] sm:$0xff]  }
 0x178   :  { %v1275_v46 = vpop.f32.mrf.mxu0  ;;  %v1368_v55 = vpop.f32.mrf.mxu1  ;;  %2883 = vmatmul.mubr.bf16.gmra.mxu1 %v2172_v52  ;;  %3826 = vmatprep.subr.bf16.mxu0 %v4107_v53  ;;  %v335_v12 = vadd.f32 %v4813_v56, %v4985_v18  ;;  %v430_v33 = vadd.f32 %v4797_v49, %v5024_v8  ;;  %v337_v42 = vadd.f32 %v4817_v58, %v4992_v7 }
 0x179   :  { %v2106_v6 = vmax.f32 %v1719_v19, 0.0  ;;  %v2076_v16 = vmax.f32 %v1689_v41, 0.0  ;;  %v1720_v44 = vadd.f32 %v1275_v46, %v327_v23  ;;  %v1690_v59 = vadd.f32 %v1368_v55, %v420_v15  ;;  %2802 = vmatmul.mubr.bf16.gmra.mxu0 %v2186_v10  ;;  %3883 = vmatpush3.bf16.msra.mxu1 %v4096_v4  ;;  %v4108_v4 = vld [vmem:[#allocation4 + $0x1d0] sm:$0xff]   ;;  %v4113_v55 = vld [vmem:[#allocation4 + $0x1c8] sm:$0xff]  }
 0x17a   :  { %v1279_v25 = vpop.f32.mrf.mxu0  ;;  %v1372_v60 = vpop.f32.mrf.mxu1  ;;  %3884 = vmatprep.subr.bf16.mxu1 %v4099_v5  ;;  %3827 = vmatpush3.bf16.msra.mxu0 %v4109_v17  ;;  %v4110_v19 = vld [vmem:[#allocation4 + $0x190] sm:$0xff]   ;;  %v434_v41 = vadd.f32 %v4801_v50, %v5017_v26  ;;  %v341_v58 = vadd.f32 %v4821_v2, %v4985_v18 }
 0x17b   :  { %v2194_v61 = vpack.c.bf16 %v2106_v6, %v2098_v29  ;;  %v2180_v52 = vpack.c.bf16 %v2076_v16, %v2068_v22  ;;  %v2107_v30 = vmax.f32 %v1720_v44, 0.0  ;;  %v2077_v10 = vmax.f32 %v1690_v59, 0.0  ;;  %3828 = vmatprep.subr.bf16.mxu0 %v4111_v37 }
 0x17c   :  { %v1727_v1 = vadd.f32 %v1279_v25, %v331_v24  ;;  %v1697_v45 = vadd.f32 %v1372_v60, %v424_v48  ;;  %v1281_v11 = vpop.f32.mrf.mxu0  ;;  %v1374_v27 = vpop.f32.mrf.mxu1  ;;  %v343_v48 = vadd.f32 %v4830_v9, %v4992_v7  ;;  %v5602_v60 = vld [vmem:[#allocation18_spill] sm:$0xff] }
 0x17d   :  { %v2195_v31 = vpack.c.bf16 %v2107_v30, %v2099_v47  ;;  %v2181_v53 = vpack.c.bf16 %v2077_v10, %v2069_v36  ;;  %3885 = vmatpush3.bf16.msra.mxu1 %v4100_v39  ;;  %v1728_v57 = vadd.f32 %v1281_v11, %v333_v28  ;;  %v1698_v35 = vadd.f32 %v1374_v27, %v426_v43  ;;  %v5601_v36 = vld [vmem:[#allocation14_spill] sm:$0xff]  ;;  %v5603_v30 = vld [vmem:[#allocation15_spill] sm:$0xff] }
 0x17e   :  { %v1283_v51 = vpop.f32.mrf.mxu0  ;;  %v1376_v13 = vpop.f32.mrf.mxu1  ;;  %3886 = vmatprep.subr.bf16.mxu1 %v4103_v20  ;;  %3829 = vmatpush3.bf16.msra.mxu0 %v4112_v63  ;;  %v2114_v56 = vmax.f32 %v1727_v1, 0.0  ;;  %v2084_v32 = vmax.f32 %v1697_v45, 0.0  ;;  %v436_v39 = vadd.f32 %v4811_v54, %v5024_v8  ;;  %v438_v25 = vadd.f32 %v5601_v36, %v5017_v26  ;;  %v4115_v1 = vld [vmem:[#allocation4 + $0x1c0] sm:$0xff]   ;;  %v5604_v45 = vld [vmem:[#allocation20_spill] sm:$0xff] }
 0x17f   :  { %v1735_v15 = vadd.f32 %v1283_v51, %v335_v12  ;;  %v1705_v38 = vadd.f32 %v1376_v13, %v428_v14  ;;  %2809 = vmatprep.mubr.bf16.mxu0 %v2195_v31  ;;  %2890 = vmatprep.mubr.bf16.mxu1 %v2181_v53  ;;  %v2115_v37 = vmax.f32 %v1728_v57, 0.0  ;;  %v2085_v29 = vmax.f32 %v1698_v35, 0.0 }
 0x180   :  { %v1285_v34 = vpop.f32.mrf.mxu0  ;;  %v1378_v3 = vpop.f32.mrf.mxu1  ;;  %2891 = vmatmul.mubr.bf16.gmra.mxu1 %v2180_v52  ;;  %v345_v20 = vadd.f32 %v5602_v60, %v4985_v18  ;;  %v4114_v52 = vld [vmem:[#allocation4 + $0x188] sm:$0xff]   ;;  %v440_v54 = vadd.f32 %v5603_v30, %v5024_v8  ;;  %v347_v11 = vadd.f32 %v5604_v45, %v4992_v7  ;;  %v119_v12 = vsub.s32 4, %v4959_v40 }
 0x181   :  { %v2122_v49 = vmax.f32 %v1735_v15, 0.0  ;;  %v2092_v5 = vmax.f32 %v1705_v38, 0.0  ;;  %v1736_v17 = vadd.f32 %v1285_v34, %v337_v42  ;;  %v1706_v23 = vadd.f32 %v1378_v3, %v430_v33  ;;  %2810 = vmatmul.mubr.bf16.gmra.mxu0 %v2194_v61  ;;  %3887 = vmatpush3.bf16.msra.mxu1 %v4104_v62  ;;  %v4116_v42 = vld [vmem:[#allocation4 + $0x180] sm:$0xff]  }
 0x182   :  { %v1289_v22 = vpop.f32.mrf.mxu0  ;;  %v1382_v46 = vpop.f32.mrf.mxu1  ;;  %3888 = vmatprep.subr.bf16.mxu1 %v4108_v4  ;;  %v123_v31 = vsub.s32 5, %v4959_v40  ;;  %v5605_v15 = vld [vmem:[#allocation10_spill] sm:$0xff]  ;;  %v5127_v36 = vrot.slane %v4973_v0, %v119_v12  ;;  %v5614_v12 = vld [vmem:[#allocation23_spill] sm:$0xff] }
 0x183   :  { %v2202_v6 = vpack.c.bf16 %v2122_v49, %v2114_v56  ;;  %v2188_v16 = vpack.c.bf16 %v2092_v5, %v2084_v32  ;;  %v2123_v44 = vmax.f32 %v1736_v17, 0.0  ;;  %v2093_v59 = vmax.f32 %v1706_v23, 0.0  ;;  %v5606_v56 = vld [vmem:[#allocation16_spill] sm:$0xff] }
 0x184   :  { %v1743_v50 = vadd.f32 %v1289_v22, %v341_v58  ;;  %v1713_v24 = vadd.f32 %v1382_v46, %v434_v41  ;;  %v1291_v47 = vpop.f32.mrf.mxu0  ;;  %v1384_v2 = vpop.f32.mrf.mxu1  ;;  %v351_v38 = vadd.f32 %v5605_v15, %v4985_v18  ;;  %v444_v32 = vadd.f32 %v5606_v56, %v5017_v26  ;;  %v5607_v58 = vld [vmem:[#allocation11_spill] sm:$0xff] }
 0x185   :  { %v2203_v63 = vpack.c.bf16 %v2123_v44, %v2115_v37  ;;  %v2189_v61 = vpack.c.bf16 %v2093_v59, %v2085_v29  ;;  %3889 = vmatpush3.bf16.msra.mxu1 %v4110_v19  ;;  %v1744_v10 = vadd.f32 %v1291_v47, %v343_v48  ;;  %v1714_v43 = vadd.f32 %v1384_v2, %v436_v39  ;;  %v5608_v29 = vld [vmem:[#allocation17_spill] sm:$0xff]  ;;  %v5609_v44 = vld [vmem:[#allocation12_spill] sm:$0xff]  ;;  %v5610_v39 = vld [vmem:[#allocation19_spill] sm:$0xff] }
 0x186   :  { %v1293_v9 = vpop.f32.mrf.mxu0  ;;  %v1386_v28 = vpop.f32.mrf.mxu1  ;;  %3890 = vmatprep.subr.bf16.mxu1 %v4113_v55  ;;  %v2130_v53 = vmax.f32 %v1743_v50, 0.0  ;;  %v2100_v62 = vmax.f32 %v1713_v24, 0.0  ;;  %v353_v37 = vadd.f32 %v5607_v58, %v4992_v7  ;;  %v446_v22 = vadd.f32 %v5608_v29, %v5024_v8  ;;  %v5611_v47 = vld [vmem:[#allocation13_spill] sm:$0xff] }
 0x187   :  { %v1751_v27 = vadd.f32 %v1293_v9, %v345_v20  ;;  %v1721_v14 = vadd.f32 %v1386_v28, %v438_v25  ;;  %2817 = vmatprep.mubr.bf16.mxu0 %v2203_v63  ;;  %2898 = vmatprep.mubr.bf16.mxu1 %v2189_v61  ;;  %v2131_v34 = vmax.f32 %v1744_v10, 0.0  ;;  %v2101_v3 = vmax.f32 %v1714_v43, 0.0  ;;  %v5612_v61 = vld [vmem:[#allocation21_spill] sm:$0xff] }
 0x188   :  { %v1295_v33 = vpop.f32.mrf.mxu0  ;;  %v1388_v57 = vpop.f32.mrf.mxu1  ;;  %2899 = vmatmul.mubr.bf16.gmra.mxu1 %v2188_v16  ;;  %v355_v59 = vadd.f32 %v5609_v44, %v4985_v18  ;;  %v448_v48 = vadd.f32 %v5610_v39, %v5017_v26  ;;  %v357_v2 = vadd.f32 %v5611_v47, %v4992_v7 }
 0x189   :  { %v2138_v35 = vmax.f32 %v1751_v27, 0.0  ;;  %v2108_v51 = vmax.f32 %v1721_v14, 0.0  ;;  %v1752_v13 = vadd.f32 %v1295_v33, %v347_v11  ;;  %v1722_v4 = vadd.f32 %v1388_v57, %v440_v54  ;;  %2818 = vmatmul.mubr.bf16.gmra.mxu0 %v2202_v6  ;;  %3891 = vmatpush3.bf16.msra.mxu1 %v4114_v52  ;;  %v5613_v27 = vld [vmem:[#allocation22_spill] sm:$0xff] }
 0x18a   :  { %v1299_v49 = vpop.f32.mrf.mxu0  ;;  %v1392_v5 = vpop.f32.mrf.mxu1  ;;  %3892 = vmatprep.subr.bf16.mxu1 %v4115_v1  ;;  %v450_v52 = vadd.f32 %v5612_v61, %v5024_v8  ;;  %v5132_v54 = vrot.slane %v4973_v0, %v123_v31  ;;  %v454_v14 = vadd.f32 %v5613_v27, %v5017_v26  ;;  %v5623_v27 = vld [vmem:[#allocation32_spill] sm:$0xff] }
 0x18b   :  { %v2210_v17 = vpack.c.bf16 %v2138_v35, %v2130_v53  ;;  %v2196_v23 = vpack.c.bf16 %v2108_v51, %v2100_v62  ;;  %v2139_v19 = vmax.f32 %v1752_v13, 0.0  ;;  %v2109_v41 = vmax.f32 %v1722_v4, 0.0 }
 0x18c   :  { %v1759_v46 = vadd.f32 %v1299_v49, %v351_v38  ;;  %v1729_v55 = vadd.f32 %v1392_v5, %v444_v32  ;;  %v1301_v6 = vpop.f32.mrf.mxu0  ;;  %v1394_v16 = vpop.f32.mrf.mxu1  ;;  %v507_v53 = vadd.f32 %v5614_v12, %v5127_v36  ;;  %v5616_v38 = vld [vmem:[#allocation25_spill] sm:$0xff]  ;;  %v5617_v5 = vld [vmem:[#allocation26_spill] sm:$0xff] }
 0x18d   :  { %v2197_v50 = vpack.c.bf16 %v2109_v41, %v2101_v3  ;;  %v2211_v24 = vpack.c.bf16 %v2139_v19, %v2131_v34  ;;  %3893 = vmatpush3.bf16.msra.mxu1 %v4116_v42  ;;  %v1760_v25 = vadd.f32 %v1301_v6, %v353_v37  ;;  %v1730_v60 = vadd.f32 %v1394_v16, %v446_v22  ;;  %v5615_v42 = vld [vmem:[#allocation24_spill] sm:$0xff]  ;;  %v5620_v16 = vld [vmem:[#allocation29_spill] sm:$0xff] }
 0x18e   :  { %v1303_v20 = vpop.f32.mrf.mxu0  ;;  %v1396_v63 = vpop.f32.mrf.mxu1  ;;  %v2146_v10 = vmax.f32 %v1759_v46, 0.0  ;;  %v2116_v43 = vmax.f32 %v1729_v55, 0.0  ;;  %v456_v15 = vadd.f32 %v5615_v42, %v5024_v8  ;;  %v509_v56 = vadd.f32 %v5616_v38, %v5132_v54  ;;  %v5619_v37 = vld [vmem:[#allocation28_spill] sm:$0xff]  ;;  %v5624_v12 = vld [vmem:[#allocation33_spill] sm:$0xff] }
 0x18f   :  { %v1767_v18 = vadd.f32 %v1303_v20, %v355_v59  ;;  %v1737_v30 = vadd.f32 %v1396_v63, %v448_v48  ;;  %2825 = vmatprep.mubr.bf16.mxu0 %v2211_v24  ;;  %2906 = vmatprep.mubr.bf16.mxu1 %v2197_v50  ;;  %v2147_v62 = vmax.f32 %v1760_v25, 0.0  ;;  %v2117_v33 = vmax.f32 %v1730_v60, 0.0  ;;  %v5627_v38 = vld [vmem:[#allocation36_spill] sm:$0xff] }
 0x190   :  { %v1305_v7 = vpop.f32.mrf.mxu0  ;;  %v1398_v9 = vpop.f32.mrf.mxu1  ;;  %2907 = vmatmul.mubr.bf16.gmra.mxu1 %v2196_v23  ;;  %v5618_v23 = vld [vmem:[#allocation27_spill] sm:$0xff]  ;;  %v460_v29 = vadd.f32 %v5619_v37, %v5024_v8  ;;  %v513_v44 = vadd.f32 %v5620_v16, %v5132_v54  ;;  %v127_v48 = vsub.s32 6, %v4959_v40  ;;  %v131_v50 = vsub.s32 7, %v4959_v40  ;;  %v5629_v16 = vld [vmem:[#allocation38_spill] sm:$0xff] }
 0x191   :  { %v2154_v28 = vmax.f32 %v1767_v18, 0.0  ;;  %v2124_v1 = vmax.f32 %v1737_v30, 0.0  ;;  %v1768_v45 = vadd.f32 %v1305_v7, %v357_v2  ;;  %v1738_v11 = vadd.f32 %v1398_v9, %v450_v52  ;;  %2826 = vmatmul.mubr.bf16.gmra.mxu0 %v2210_v17  ;;  %v5621_v52 = vld [vmem:[#allocation30_spill] sm:$0xff]  ;;  %v5622_v30 = vld [vmem:[#allocation31_spill] sm:$0xff] }
 0x192   :  { %v1402_v31 = vpop.f32.mrf.mxu1  ;;  %v1455_v57 = vpop.f32.mrf.mxu0  ;;  %v458_v17 = vadd.f32 %v5617_v5, %v5017_v26  ;;  %v511_v19 = vadd.f32 %v5618_v23, %v5127_v36  ;;  %v464_v18 = vadd.f32 %v5621_v52, %v5017_v26 }
 0x193   :  { %v2218_v35 = vpack.c.bf16 %v2154_v28, %v2146_v10  ;;  %v2204_v51 = vpack.c.bf16 %v2124_v1, %v2116_v43  ;;  %v2155_v13 = vmax.f32 %v1768_v45, 0.0  ;;  %v2125_v4 = vmax.f32 %v1738_v11, 0.0 }
 0x194   :  { %v1745_v32 = vadd.f32 %v1402_v31, %v454_v14  ;;  %v1651_v34 = vadd.f32 %v1455_v57, %v507_v53  ;;  %v1404_v3 = vpop.f32.mrf.mxu1  ;;  %v1457_v49 = vpop.f32.mrf.mxu0  ;;  %v517_v10 = vadd.f32 %v5622_v30, %v5127_v36  ;;  %v466_v14 = vadd.f32 %v5623_v27, %v5024_v8 }
 0x195   :  { %v2205_v41 = vpack.c.bf16 %v2125_v4, %v2117_v33  ;;  %v2219_v58 = vpack.c.bf16 %v2155_v13, %v2147_v62  ;;  %v1746_v22 = vadd.f32 %v1404_v3, %v456_v15  ;;  %v1652_v46 = vadd.f32 %v1457_v49, %v509_v56  ;;  %v5626_v13 = vld [vmem:[#allocation35_spill] sm:$0xff] }
 0x196   :  { %v1406_v55 = vpop.f32.mrf.mxu1  ;;  %v1459_v6 = vpop.f32.mrf.mxu0  ;;  %v2132_v24 = vmax.f32 %v1745_v32, 0.0  ;;  %v2038_v47 = vmax.f32 %v1651_v34, 0.0  ;;  %v519_v53 = vadd.f32 %v5624_v12, %v5132_v54  ;;  %v521_v4 = vadd.f32 %v5626_v13, %v5127_v36 }
 0x197   :  { %v1753_v59 = vadd.f32 %v1406_v55, %v458_v17  ;;  %v1659_v39 = vadd.f32 %v1459_v6, %v511_v19  ;;  %2833 = vmatprep.mubr.bf16.mxu0 %v2219_v58  ;;  %2914 = vmatprep.mubr.bf16.mxu1 %v2205_v41  ;;  %v2133_v43 = vmax.f32 %v1746_v22, 0.0  ;;  %v2039_v7 = vmax.f32 %v1652_v46, 0.0  ;;  %v5628_v17 = vld [vmem:[#allocation37_spill] sm:$0xff] }
 0x198   :  { %v1408_v2 = vpop.f32.mrf.mxu1  ;;  %v1461_v25 = vpop.f32.mrf.mxu0  ;;  %2915 = vmatmul.mubr.bf16.gmra.mxu1 %v2204_v51  ;;  %v470_v56 = vadd.f32 %v5627_v38, %v5024_v8  ;;  %v5167_v32 = vrot.slane %v4973_v0, %v127_v48  ;;  %v523_v23 = vadd.f32 %v5628_v17, %v5132_v54  ;;  %v5172_v41 = vrot.slane %v4973_v0, %v131_v50 }
 0x199   :  { %v2140_v60 = vmax.f32 %v1753_v59, 0.0  ;;  %v2046_v20 = vmax.f32 %v1659_v39, 0.0  ;;  %v1754_v63 = vadd.f32 %v1408_v2, %v460_v29  ;;  %v1660_v61 = vadd.f32 %v1461_v25, %v513_v44  ;;  %2834 = vmatmul.mubr.bf16.gmra.mxu0 %v2218_v35  ;;  %v5625_v35 = vld [vmem:[#allocation34_spill] sm:$0xff]  ;;  %v5630_v59 = vld [vmem:[#allocation39_spill] sm:$0xff] }
 0x19a   :  { %v1412_v9 = vpop.f32.mrf.mxu1  ;;  %v1465_v40 = vpop.f32.mrf.mxu0  ;;  %v468_v51 = vadd.f32 %v5625_v35, %v5017_v26  ;;  %v527_v44 = vadd.f32 %v5629_v16, %v5127_v36  ;;  %v620_v39 = vadd.f32 %v5630_v59, %v5167_v32 }
 0x19b   :  { %v2212_v28 = vpack.c.bf16 %v2140_v60, %v2132_v24  ;;  %v2166_v1 = vpack.c.bf16 %v2046_v20, %v2038_v47  ;;  %v2141_v45 = vmax.f32 %v1754_v63, 0.0  ;;  %v2047_v11 = vmax.f32 %v1660_v61, 0.0  ;;  %v5631_v20 = vld [vmem:[#allocation40_spill] sm:$0xff]  ;;  %v5632_v61 = vld [vmem:[#allocation41_spill] sm:$0xff] }
 0x19c   :  { %v1761_v62 = vadd.f32 %v1412_v9, %v464_v18  ;;  %v1667_v33 = vadd.f32 %v1465_v40, %v517_v10  ;;  %v1414_v31 = vpop.f32.mrf.mxu1  ;;  %v1467_v57 = vpop.f32.mrf.mxu0  ;;  %v529_v63 = vadd.f32 %v5631_v20, %v5132_v54  ;;  %v622_v52 = vadd.f32 %v5632_v61, %v5172_v41  ;;  %v5634_v40 = vld [vmem:[#allocation43_spill] sm:$0xff] }
 0x19d   :  { %v2213_v42 = vpack.c.bf16 %v2141_v45, %v2133_v43  ;;  %v2167_v15 = vpack.c.bf16 %v2047_v11, %v2039_v7  ;;  %v1762_v34 = vadd.f32 %v1414_v31, %v466_v14  ;;  %v1668_v3 = vadd.f32 %v1467_v57, %v519_v53  ;;  %v5633_v7 = vld [vmem:[#allocation42_spill] sm:$0xff]  ;;  %v5635_v11 = vld [vmem:[#allocation44_spill] sm:$0xff] }
 0x19e   :  { %v1416_v49 = vpop.f32.mrf.mxu1  ;;  %v1469_v5 = vpop.f32.mrf.mxu0  ;;  %v2148_v58 = vmax.f32 %v1761_v62, 0.0  ;;  %v2054_v37 = vmax.f32 %v1667_v33, 0.0  ;;  %v531_v9 = vadd.f32 %v5633_v7, %v5127_v36  ;;  %v533_v27 = vadd.f32 %v5635_v11, %v5132_v54  ;;  %v5636_v33 = vld [vmem:[#allocation45_spill] sm:$0xff] }
 0x19f   :  { %v1769_v19 = vadd.f32 %v1416_v49, %v468_v51  ;;  %v1675_v26 = vadd.f32 %v1469_v5, %v521_v4  ;;  %2922 = vmatprep.mubr.bf16.mxu1 %v2213_v42  ;;  %2971 = vmatprep.mubr.bf16.mxu0 %v2167_v15  ;;  %v2149_v48 = vmax.f32 %v1762_v34, 0.0  ;;  %v2055_v24 = vmax.f32 %v1668_v3, 0.0  ;;  %v5637_v3 = vld [vmem:[#allocation46_spill] sm:$0xff]  ;;  %v5638_v5 = vld [vmem:[#allocation47_spill] sm:$0xff] }
 0x1a0   :  { %v1418_v8 = vpop.f32.mrf.mxu1  ;;  %v1471_v29 = vpop.f32.mrf.mxu0  ;;  %2923 = vmatmul.mubr.bf16.gmra.mxu1 %v2212_v28  ;;  %v624_v28 = vadd.f32 %v5634_v40, %v5167_v32  ;;  %v626_v31 = vadd.f32 %v5636_v33, %v5172_v41  ;;  %v537_v49 = vadd.f32 %v5637_v3, %v5127_v36  ;;  %v630_v17 = vadd.f32 %v5638_v5, %v5167_v32 }
 0x1a1   :  { %v2156_v22 = vmax.f32 %v1769_v19, 0.0  ;;  %v2062_v46 = vmax.f32 %v1675_v26, 0.0  ;;  %v1770_v55 = vadd.f32 %v1418_v8, %v470_v56  ;;  %v1676_v6 = vadd.f32 %v1471_v29, %v523_v23  ;;  %2972 = vmatmul.mubr.bf16.vlgmr.msra.gmra.mxu0 %v2166_v1 }
 0x1a2   :  { %v1475_v0 = vpop.f32.mrf.mxu0  ;;  %v1568_v50 = vpop.f32.mrf.mxu1 }
 0x1a3   :  { %v2220_v47 = vpack.c.bf16 %v2156_v22, %v2148_v58  ;;  %v2174_v2 = vpack.c.bf16 %v2062_v46, %v2054_v37  ;;  %v2157_v25 = vmax.f32 %v1770_v55, 0.0  ;;  %v2063_v60 = vmax.f32 %v1676_v6, 0.0  ;;  %v5639_v46 = vld [vmem:[#allocation48_spill] sm:$0xff]  ;;  %v5640_v6 = vld [vmem:[#allocation49_spill] sm:$0xff] }
 0x1a4   :  { %v1683_v18 = vadd.f32 %v1475_v0, %v527_v44  ;;  %v1653_v30 = vadd.f32 %v1568_v50, %v620_v39  ;;  %v1477_v10 = vpop.f32.mrf.mxu0  ;;  %v1570_v43 = vpop.f32.mrf.mxu1  ;;  %v539_v55 = vadd.f32 %v5639_v46, %v5132_v54  ;;  %v632_v16 = vadd.f32 %v5640_v6, %v5172_v41  ;;  %v5642_v50 = vld [vmem:[#allocation51_spill] sm:$0xff] }
 0x1a5   :  { %v2221_v1 = vpack.c.bf16 %v2157_v25, %v2149_v48  ;;  %v2175_v45 = vpack.c.bf16 %v2063_v60, %v2055_v24  ;;  %v1684_v14 = vadd.f32 %v1477_v10, %v529_v63  ;;  %v1654_v12 = vadd.f32 %v1570_v43, %v622_v52  ;;  %v5641_v24 = vld [vmem:[#allocation50_spill] sm:$0xff]  ;;  %v5643_v60 = vld [vmem:[#allocation52_spill] sm:$0xff] }
 0x1a6   :  { %v1479_v53 = vpop.f32.mrf.mxu0  ;;  %v1572_v62 = vpop.f32.mrf.mxu1  ;;  %v2070_v51 = vmax.f32 %v1683_v18, 0.0  ;;  %v2040_v13 = vmax.f32 %v1653_v30, 0.0  ;;  %v541_v0 = vadd.f32 %v5641_v24, %v5127_v36  ;;  %v543_v20 = vadd.f32 %v5643_v60, %v5132_v54  ;;  %v5644_v30 = vld [vmem:[#allocation53_spill] sm:$0xff] }
 0x1a7   :  { %v1691_v57 = vadd.f32 %v1479_v53, %v531_v9  ;;  %v1661_v35 = vadd.f32 %v1572_v62, %v624_v28  ;;  %2930 = vmatprep.mubr.bf16.mxu1 %v2221_v1  ;;  %2979 = vmatprep.mubr.bf16.mxu0 %v2175_v45  ;;  %v2071_v23 = vmax.f32 %v1684_v14, 0.0  ;;  %v2041_v19 = vmax.f32 %v1654_v12, 0.0  ;;  %v5645_v12 = vld [vmem:[#allocation54_spill] sm:$0xff]  ;;  %v5646_v62 = vld [vmem:[#allocation55_spill] sm:$0xff] }
 0x1a8   :  { %v1481_v4 = vpop.f32.mrf.mxu0  ;;  %v1574_v42 = vpop.f32.mrf.mxu1  ;;  %2931 = vmatmul.mubr.bf16.gmra.mxu1 %v2220_v47  ;;  %v634_v47 = vadd.f32 %v5642_v50, %v5167_v32  ;;  %v636_v10 = vadd.f32 %v5644_v30, %v5172_v41  ;;  %v547_v53 = vadd.f32 %v5645_v12, %v5127_v36  ;;  %v640_v33 = vadd.f32 %v5646_v62, %v5167_v32 }
 0x1a9   :  { %v2078_v15 = vmax.f32 %v1691_v57, 0.0  ;;  %v2048_v38 = vmax.f32 %v1661_v35, 0.0  ;;  %v1692_v56 = vadd.f32 %v1481_v4, %v533_v27  ;;  %v1662_v34 = vadd.f32 %v1574_v42, %v626_v31  ;;  %2980 = vmatmul.mubr.bf16.gmra.mxu0 %v2174_v2 }
 0x1aa   :  { %v1485_v26 = vpop.f32.mrf.mxu0  ;;  %v1578_v58 = vpop.f32.mrf.mxu1 }
 0x1ab   :  { %v2182_v37 = vpack.c.bf16 %v2078_v15, %v2070_v51  ;;  %v2168_v8 = vpack.c.bf16 %v2048_v38, %v2040_v13  ;;  %v2079_v29 = vmax.f32 %v1692_v56, 0.0  ;;  %v2049_v22 = vmax.f32 %v1662_v34, 0.0  ;;  %v5647_v38 = vld [vmem:[#allocation56_spill] sm:$0xff]  ;;  %v5648_v34 = vld [vmem:[#allocation57_spill] sm:$0xff] }
 0x1ac   :  { %v1699_v44 = vadd.f32 %v1485_v26, %v537_v49  ;;  %v1669_v59 = vadd.f32 %v1578_v58, %v630_v17  ;;  %v1487_v39 = vpop.f32.mrf.mxu0  ;;  %v1580_v48 = vpop.f32.mrf.mxu1  ;;  %v549_v56 = vadd.f32 %v5647_v38, %v5132_v54  ;;  %v642_v3 = vadd.f32 %v5648_v34, %v5172_v41  ;;  %v5650_v58 = vld [vmem:[#allocation59_spill] sm:$0xff] }
 0x1ad   :  { %v2183_v2 = vpack.c.bf16 %v2079_v29, %v2071_v23  ;;  %v2169_v25 = vpack.c.bf16 %v2049_v22, %v2041_v19  ;;  %v1700_v63 = vadd.f32 %v1487_v39, %v539_v55  ;;  %v1670_v61 = vadd.f32 %v1580_v48, %v632_v16  ;;  %v5649_v19 = vld [vmem:[#allocation58_spill] sm:$0xff]  ;;  %v5651_v22 = vld [vmem:[#allocation60_spill] sm:$0xff] }
 0x1ae   :  { %v1489_v52 = vpop.f32.mrf.mxu0  ;;  %v1582_v18 = vpop.f32.mrf.mxu1  ;;  %v2086_v9 = vmax.f32 %v1699_v44, 0.0  ;;  %v2056_v40 = vmax.f32 %v1669_v59, 0.0  ;;  %v551_v26 = vadd.f32 %v5649_v19, %v5127_v36  ;;  %v553_v46 = vadd.f32 %v5651_v22, %v5132_v54  ;;  %v5652_v59 = vld [vmem:[#allocation61_spill] sm:$0xff] }
 0x1af   :  { %v1707_v43 = vadd.f32 %v1489_v52, %v541_v0  ;;  %v1677_v7 = vadd.f32 %v1582_v18, %v634_v47  ;;  %2987 = vmatprep.mubr.bf16.mxu0 %v2183_v2  ;;  %3068 = vmatprep.mubr.bf16.mxu1 %v2169_v25  ;;  %v2087_v31 = vmax.f32 %v1700_v63, 0.0  ;;  %v2057_v57 = vmax.f32 %v1670_v61, 0.0  ;;  %v5653_v61 = vld [vmem:[#allocation62_spill] sm:$0xff]  ;;  %v5654_v18 = vld [vmem:[#allocation63_spill] sm:$0xff] }
 0x1b0   :  { %v1491_v28 = vpop.f32.mrf.mxu0  ;;  %v1584_v1 = vpop.f32.mrf.mxu1  ;;  %3069 = vmatmul.mubr.bf16.vlgmr.msra.gmra.mxu1 %v2168_v8  ;;  %v646_v39 = vadd.f32 %v5652_v59, %v5172_v41  ;;  %v557_v52 = vadd.f32 %v5653_v61, %v5127_v36  ;;  %v650_v30 = vadd.f32 %v5654_v18, %v5167_v32 }
 0x1b1   :  { %v2094_v45 = vmax.f32 %v1707_v43, 0.0  ;;  %v2064_v11 = vmax.f32 %v1677_v7, 0.0  ;;  %v1708_v27 = vadd.f32 %v1491_v28, %v543_v20  ;;  %v1678_v14 = vadd.f32 %v1584_v1, %v636_v10  ;;  %2988 = vmatmul.mubr.bf16.gmra.mxu0 %v2182_v37 }
 0x1b2   :  { %v1495_v35 = vpop.f32.mrf.mxu0  ;;  %v1588_v51 = vpop.f32.mrf.mxu1  ;;  %v644_v37 = vadd.f32 %v5650_v58, %v5167_v32 }
 0x1b3   :  { %v2190_v13 = vpack.c.bf16 %v2094_v45, %v2086_v9  ;;  %v2176_v4 = vpack.c.bf16 %v2064_v11, %v2056_v40  ;;  %v2095_v42 = vmax.f32 %v1708_v27, 0.0  ;;  %v2065_v15 = vmax.f32 %v1678_v14, 0.0  ;;  %v5655_v11 = vld [vmem:[#allocation64_spill] sm:$0xff]  ;;  %v5656_v14 = vld [vmem:[#allocation65_spill] sm:$0xff] }
 0x1b4   :  { %v1715_v49 = vadd.f32 %v1495_v35, %v547_v53  ;;  %v1685_v5 = vadd.f32 %v1588_v51, %v640_v33  ;;  %v1497_v17 = vpop.f32.mrf.mxu0  ;;  %v1590_v23 = vpop.f32.mrf.mxu1  ;;  %v559_v27 = vadd.f32 %v5655_v11, %v5132_v54  ;;  %v652_v12 = vadd.f32 %v5656_v14, %v5172_v41  ;;  %v5658_v51 = vld [vmem:[#allocation67_spill] sm:$0xff] }
 0x1b5   :  { %v2191_v8 = vpack.c.bf16 %v2095_v42, %v2087_v31  ;;  %v2177_v29 = vpack.c.bf16 %v2065_v15, %v2057_v57  ;;  %v1716_v55 = vadd.f32 %v1497_v17, %v549_v56  ;;  %v1686_v6 = vadd.f32 %v1590_v23, %v642_v3  ;;  %v5657_v57 = vld [vmem:[#allocation66_spill] sm:$0xff]  ;;  %v5659_v15 = vld [vmem:[#allocation68_spill] sm:$0xff] }
 0x1b6   :  { %v1499_v16 = vpop.f32.mrf.mxu0  ;;  %v1592_v44 = vpop.f32.mrf.mxu1  ;;  %v2102_v0 = vmax.f32 %v1715_v49, 0.0  ;;  %v2072_v50 = vmax.f32 %v1685_v5, 0.0  ;;  %v561_v35 = vadd.f32 %v5657_v57, %v5127_v36  ;;  %v563_v38 = vadd.f32 %v5659_v15, %v5132_v54  ;;  %v5660_v5 = vld [vmem:[#allocation69_spill] sm:$0xff] }
 0x1b7   :  { %v1723_v48 = vadd.f32 %v1499_v16, %v551_v26  ;;  %v1693_v24 = vadd.f32 %v1592_v44, %v644_v37  ;;  %2995 = vmatprep.mubr.bf16.mxu0 %v2191_v8  ;;  %3076 = vmatprep.mubr.bf16.mxu1 %v2177_v29  ;;  %v2103_v10 = vmax.f32 %v1716_v55, 0.0  ;;  %v2073_v43 = vmax.f32 %v1686_v6, 0.0  ;;  %v5661_v6 = vld [vmem:[#allocation70_spill] sm:$0xff]  ;;  %v5662_v44 = vld [vmem:[#allocation71_spill] sm:$0xff] }
 0x1b8   :  { %v1501_v47 = vpop.f32.mrf.mxu0  ;;  %v1594_v2 = vpop.f32.mrf.mxu1  ;;  %3077 = vmatmul.mubr.bf16.gmra.mxu1 %v2176_v4  ;;  %v656_v17 = vadd.f32 %v5660_v5, %v5172_v41  ;;  %v567_v16 = vadd.f32 %v5661_v6, %v5127_v36  ;;  %v660_v59 = vadd.f32 %v5662_v44, %v5167_v32 }
 0x1b9   :  { %v2110_v25 = vmax.f32 %v1723_v48, 0.0  ;;  %v2080_v60 = vmax.f32 %v1693_v24, 0.0  ;;  %v1724_v20 = vadd.f32 %v1501_v47, %v553_v46  ;;  %v1694_v63 = vadd.f32 %v1594_v2, %v646_v39  ;;  %2996 = vmatmul.mubr.bf16.gmra.mxu0 %v2190_v13 }
 0x1ba   :  { %v1505_v7 = vpop.f32.mrf.mxu0  ;;  %v1598_v9 = vpop.f32.mrf.mxu1  ;;  %v654_v13 = vadd.f32 %v5658_v51, %v5167_v32 }
 0x1bb   :  { %v2198_v40 = vpack.c.bf16 %v2110_v25, %v2102_v0  ;;  %v2184_v28 = vpack.c.bf16 %v2080_v60, %v2072_v50  ;;  %v2111_v1 = vmax.f32 %v1724_v20, 0.0  ;;  %v2081_v45 = vmax.f32 %v1694_v63, 0.0  ;;  %v5663_v60 = vld [vmem:[#allocation72_spill] sm:$0xff]  ;;  %v5664_v63 = vld [vmem:[#allocation73_spill] sm:$0xff] }
 0x1bc   :  { %v1731_v53 = vadd.f32 %v1505_v7, %v557_v52  ;;  %v1701_v62 = vadd.f32 %v1598_v9, %v650_v30  ;;  %v1507_v33 = vpop.f32.mrf.mxu0  ;;  %v1600_v31 = vpop.f32.mrf.mxu1  ;;  %v569_v20 = vadd.f32 %v5663_v60, %v5132_v54  ;;  %v662_v61 = vadd.f32 %v5664_v63, %v5172_v41  ;;  %v5666_v9 = vld [vmem:[#allocation75_spill] sm:$0xff] }
 0x1bd   :  { %v2199_v4 = vpack.c.bf16 %v2111_v1, %v2103_v10  ;;  %v2185_v42 = vpack.c.bf16 %v2081_v45, %v2073_v43  ;;  %v1732_v56 = vadd.f32 %v1507_v33, %v559_v27  ;;  %v1702_v34 = vadd.f32 %v1600_v31, %v652_v12  ;;  %v5665_v43 = vld [vmem:[#allocation74_spill] sm:$0xff]  ;;  %v5667_v45 = vld [vmem:[#allocation76_spill] sm:$0xff] }
 0x1be   :  { %v1509_v3 = vpop.f32.mrf.mxu0  ;;  %v1602_v49 = vpop.f32.mrf.mxu1  ;;  %v2118_v26 = vmax.f32 %v1731_v53, 0.0  ;;  %v2088_v58 = vmax.f32 %v1701_v62, 0.0  ;;  %v571_v7 = vadd.f32 %v5665_v43, %v5127_v36  ;;  %v573_v11 = vadd.f32 %v5667_v45, %v5132_v54  ;;  %v5668_v62 = vld [vmem:[#allocation77_spill] sm:$0xff] }
 0x1bf   :  { %v1739_v23 = vadd.f32 %v1509_v3, %v561_v35  ;;  %v1709_v19 = vadd.f32 %v1602_v49, %v654_v13  ;;  %3003 = vmatprep.mubr.bf16.mxu0 %v2199_v4  ;;  %3084 = vmatprep.mubr.bf16.mxu1 %v2185_v42  ;;  %v2119_v39 = vmax.f32 %v1732_v56, 0.0  ;;  %v2089_v48 = vmax.f32 %v1702_v34, 0.0  ;;  %v5669_v34 = vld [vmem:[#allocation78_spill] sm:$0xff]  ;;  %v5670_v49 = vld [vmem:[#allocation79_spill] sm:$0xff] }
 0x1c0   :  { %v1511_v37 = vpop.f32.mrf.mxu0  ;;  %v1604_v8 = vpop.f32.mrf.mxu1  ;;  %3085 = vmatmul.mubr.bf16.gmra.mxu1 %v2184_v28  ;;  %v666_v33 = vadd.f32 %v5668_v62, %v5172_v41  ;;  %v577_v3 = vadd.f32 %v5669_v34, %v5127_v36  ;;  %v670_v5 = vadd.f32 %v5670_v49, %v5167_v32 }
 0x1c1   :  { %v2126_v29 = vmax.f32 %v1739_v23, 0.0  ;;  %v2096_v22 = vmax.f32 %v1709_v19, 0.0  ;;  %v1740_v46 = vadd.f32 %v1511_v37, %v563_v38  ;;  %v1710_v55 = vadd.f32 %v1604_v8, %v656_v17  ;;  %3004 = vmatmul.mubr.bf16.gmra.mxu0 %v2198_v40 }
 0x1c2   :  { %v1515_v24 = vpop.f32.mrf.mxu0  ;;  %v1608_v0 = vpop.f32.mrf.mxu1  ;;  %v664_v40 = vadd.f32 %v5666_v9, %v5167_v32 }
 0x1c3   :  { %v2206_v50 = vpack.c.bf16 %v2126_v29, %v2118_v26  ;;  %v2192_v47 = vpack.c.bf16 %v2096_v22, %v2088_v58  ;;  %v2127_v2 = vmax.f32 %v1740_v46, 0.0  ;;  %v2097_v25 = vmax.f32 %v1710_v55, 0.0  ;;  %v5671_v22 = vld [vmem:[#allocation80_spill] sm:$0xff]  ;;  %v5672_v55 = vld [vmem:[#allocation81_spill] sm:$0xff] }
 0x1c4   :  { %v1747_v52 = vadd.f32 %v1515_v24, %v567_v16  ;;  %v1717_v18 = vadd.f32 %v1608_v0, %v660_v59  ;;  %v1517_v30 = vpop.f32.mrf.mxu0  ;;  %v1610_v10 = vpop.f32.mrf.mxu1  ;;  %v579_v46 = vadd.f32 %v5671_v22, %v5132_v54  ;;  %v672_v6 = vadd.f32 %v5672_v55, %v5172_v41  ;;  %v5674_v0 = vld [vmem:[#allocation83_spill] sm:$0xff] }
 0x1c5   :  { %v2207_v28 = vpack.c.bf16 %v2127_v2, %v2119_v39  ;;  %v2193_v1 = vpack.c.bf16 %v2097_v25, %v2089_v48  ;;  %v1748_v27 = vadd.f32 %v1517_v30, %v569_v20  ;;  %v1718_v14 = vadd.f32 %v1610_v10, %v662_v61  ;;  %v5673_v48 = vld [vmem:[#allocation82_spill] sm:$0xff]  ;;  %v5675_v25 = vld [vmem:[#allocation84_spill] sm:$0xff] }
 0x1c6   :  { %v1519_v12 = vpop.f32.mrf.mxu0  ;;  %v1612_v53 = vpop.f32.mrf.mxu1  ;;  %v2134_v35 = vmax.f32 %v1747_v52, 0.0  ;;  %v2104_v51 = vmax.f32 %v1717_v18, 0.0  ;;  %v581_v24 = vadd.f32 %v5673_v48, %v5127_v36  ;;  %v583_v60 = vadd.f32 %v5675_v25, %v5132_v54  ;;  %v5676_v18 = vld [vmem:[#allocation85_spill] sm:$0xff] }
 0x1c7   :  { %v1755_v31 = vadd.f32 %v1519_v12, %v571_v7  ;;  %v1725_v57 = vadd.f32 %v1612_v53, %v664_v40  ;;  %3011 = vmatprep.mubr.bf16.mxu0 %v2207_v28  ;;  %3092 = vmatprep.mubr.bf16.mxu1 %v2193_v1  ;;  %v2135_v17 = vmax.f32 %v1748_v27, 0.0  ;;  %v2105_v23 = vmax.f32 %v1718_v14, 0.0 }
 0x1c8   :  { %v1521_v13 = vpop.f32.mrf.mxu0  ;;  %v1614_v4 = vpop.f32.mrf.mxu1  ;;  %3093 = vmatmul.mubr.bf16.gmra.mxu1 %v2192_v47  ;;  %v676_v30 = vadd.f32 %v5676_v18, %v5172_v41 }
 0x1c9   :  { %v2142_v42 = vmax.f32 %v1755_v31, 0.0  ;;  %v2112_v15 = vmax.f32 %v1725_v57, 0.0  ;;  %v1756_v38 = vadd.f32 %v1521_v13, %v573_v11  ;;  %v1726_v56 = vadd.f32 %v1614_v4, %v666_v33  ;;  %3012 = vmatmul.mubr.bf16.gmra.mxu0 %v2206_v50  ;;  %v5677_v11 = vld [vmem:[#allocation86_spill] sm:$0xff]  ;;  %v5679_v4 = vld [vmem:[#allocation88_spill] sm:$0xff] }
 0x1ca   :  { %v1525_v19 = vpop.f32.mrf.mxu0  ;;  %v1618_v26 = vpop.f32.mrf.mxu1  ;;  %v674_v50 = vadd.f32 %v5674_v0, %v5167_v32  ;;  %v680_v27 = vadd.f32 %v5677_v11, %v5167_v32 }
 0x1cb   :  { %v2214_v58 = vpack.c.bf16 %v2142_v42, %v2134_v35  ;;  %v2200_v37 = vpack.c.bf16 %v2112_v15, %v2104_v51  ;;  %v2143_v8 = vmax.f32 %v1756_v38, 0.0  ;;  %v2113_v29 = vmax.f32 %v1726_v56, 0.0  ;;  %v5678_v35 = vld [vmem:[#allocation87_spill] sm:$0xff] }
 0x1cc   :  { %v1763_v16 = vadd.f32 %v1525_v19, %v577_v3  ;;  %v1733_v44 = vadd.f32 %v1618_v26, %v670_v5  ;;  %v1527_v59 = vpop.f32.mrf.mxu0  ;;  %v1620_v39 = vpop.f32.mrf.mxu1  ;;  %v682_v51 = vadd.f32 %v5678_v35, %v5172_v41  ;;  %v684_v42 = vadd.f32 %v5679_v4, %v5167_v32  ;;  %v5680_v3 = vld [vmem:[#allocation89_spill] sm:$0xff] }
 0x1cd   :  { %v2215_v47 = vpack.c.bf16 %v2143_v8, %v2135_v17  ;;  %v2201_v2 = vpack.c.bf16 %v2113_v29, %v2105_v23  ;;  %v1764_v20 = vadd.f32 %v1527_v59, %v579_v46  ;;  %v1734_v63 = vadd.f32 %v1620_v39, %v672_v6  ;;  %v5681_v8 = vld [vmem:[#allocation90_spill] sm:$0xff]  ;;  %v5683_v59 = vld [vmem:[#allocation92_spill] sm:$0xff] }
 0x1ce   :  { %v1529_v61 = vpop.f32.mrf.mxu0  ;;  %v1622_v52 = vpop.f32.mrf.mxu1  ;;  %v2150_v36 = vmax.f32 %v1763_v16, 0.0  ;;  %v2120_v7 = vmax.f32 %v1733_v44, 0.0  ;;  %v686_v49 = vadd.f32 %v5680_v3, %v5172_v41  ;;  %v690_v29 = vadd.f32 %v5681_v8, %v5167_v32  ;;  %v5682_v16 = vld [vmem:[#allocation91_spill] sm:$0xff] }
 0x1cf   :  { %v1771_v10 = vadd.f32 %v1529_v61, %v581_v24  ;;  %v1741_v43 = vadd.f32 %v1622_v52, %v674_v50  ;;  %3019 = vmatprep.mubr.bf16.mxu0 %v2215_v47  ;;  %3100 = vmatprep.mubr.bf16.mxu1 %v2201_v2  ;;  %v2151_v14 = vmax.f32 %v1764_v20, 0.0  ;;  %v2121_v12 = vmax.f32 %v1734_v63, 0.0  ;;  %v4117_v61 = vld [vmem:[%s5513_s7 + $0x38] sm:$0xff]  }
 0x1d0   :  { %v1531_v9 = vpop.f32.mrf.mxu0  ;;  %v1624_v40 = vpop.f32.mrf.mxu1  ;;  %3101 = vmatmul.mubr.bf16.gmra.mxu1 %v2200_v37  ;;  %v692_v44 = vadd.f32 %v5682_v16, %v5172_v41  ;;  %v694_v39 = vadd.f32 %v5683_v59, %v5167_v32  ;;  %v696_v50 = vadd.f32 %v5028_v21, %v5172_v41  ;;  %3975 = vmatprep.subr.bf16.mxu0 %v4117_v61  ;;  %v4118_v21 = vld [vmem:[%s5513_s7 + $0x30] sm:$0xff]   ;;  %v4119_v41 = vld [vmem:[%s5513_s7 + $0x28] sm:$0xff]  }
 0x1d1   :  { %v2158_v28 = vmax.f32 %v1771_v10, 0.0  ;;  %v2128_v1 = vmax.f32 %v1741_v43, 0.0  ;;  %v1772_v45 = vadd.f32 %v1531_v9, %v583_v60  ;;  %v1742_v54 = vadd.f32 %v1624_v40, %v676_v30  ;;  %3020 = vmatmul.mubr.bf16.gmra.mxu0 %v2214_v58  ;;  %v4120_v10 = vld [vmem:[%s5513_s7 + $0x20] sm:$0xff]   ;;  %v4121_v43 = vld [vmem:[%s5513_s7 + $0x18] sm:$0xff]  }
 0x1d2   :  { %v1628_v53 = vpop.f32.mrf.mxu1  ;;  %3976 = vmatpush3.bf16.msra.mxu0 %v4117_v61  ;;  %v4124_v9 = vld [vmem:[%s5513_s7] sm:$0xff]  }
 0x1d3   :  { %v2222_v62 = vpack.c.bf16 %v2158_v28, %v2150_v36  ;;  %v2208_v33 = vpack.c.bf16 %v2128_v1, %v2120_v7  ;;  %v2159_v31 = vmax.f32 %v1772_v45, 0.0  ;;  %v2129_v57 = vmax.f32 %v1742_v54, 0.0  ;;  %3977 = vmatprep.subr.bf16.mxu0 %v4118_v21  ;;  %v4122_v36 = vld [vmem:[%s5513_s7 + $0x10] sm:$0xff]   ;;  %v4123_v7 = vld [vmem:[%s5513_s7 + $0x8] sm:$0xff]  }
 0x1d4   :  { %v1630_v13 = vpop.f32.mrf.mxu1  ;;  %v1749_v56 = vadd.f32 %v1628_v53, %v680_v27 }
 0x1d5   :  { %v2223_v15 = vpack.c.bf16 %v2159_v31, %v2151_v14  ;;  %v2209_v38 = vpack.c.bf16 %v2129_v57, %v2121_v12  ;;  %v1750_v5 = vadd.f32 %v1630_v13, %v682_v51 }
 0x1d6   :  { %v1632_v34 = vpop.f32.mrf.mxu1  ;;  %v2136_v19 = vmax.f32 %v1749_v56, 0.0  ;;  %3978 = vmatpush3.bf16.msra.mxu0 %v4118_v21 }
 0x1d7   :  { %v1757_v17 = vadd.f32 %v1632_v34, %v684_v42  ;;  %3027 = vmatprep.mubr.bf16.mxu0 %v2223_v15  ;;  %3108 = vmatprep.mubr.bf16.mxu1 %v2209_v38  ;;  %v2137_v22 = vmax.f32 %v1750_v5, 0.0 }
 0x1d8   :  { %v1634_v23 = vpop.f32.mrf.mxu1  ;;  %3109 = vmatmul.mubr.bf16.gmra.mxu1 %v2208_v33  ;;  %3979 = vmatprep.subr.bf16.mxu0 %v4119_v41 }
 0x1d9   :  { %v2144_v26 = vmax.f32 %v1757_v17, 0.0  ;;  %v1758_v58 = vadd.f32 %v1634_v23, %v686_v49  ;;  %3028 = vmatmul.mubr.bf16.gmra.mxu0 %v2222_v62  ;;  %v5321_v62 = vld [vmem:[%s5512_s6] ss:$0 sm:$0xff] }
 0x1da   :  { %v1638_v37 = vpop.f32.mrf.mxu1  ;;  %3980 = vmatpush3.bf16.msra.mxu0 %v4119_v41 }
 0x1db   :  { %v2216_v46 = vpack.c.bf16 %v2144_v26, %v2136_v19  ;;  %v2145_v55 = vmax.f32 %v1758_v58, 0.0  ;;  %v1765_v24 = vadd.f32 %v1638_v37, %v690_v29  ;;  %3981 = vmatprep.subr.bf16.mxu0 %v4120_v10 }
 0x1dc   :  { %v1640_v6 = vpop.f32.mrf.mxu1 }
 0x1dd   :  { %v2217_v48 = vpack.c.bf16 %v2145_v55, %v2137_v22  ;;  %v1766_v47 = vadd.f32 %v1640_v6, %v692_v44  ;;  %v2152_v60 = vmax.f32 %v1765_v24, 0.0 }
 0x1de   :  { %v1642_v0 = vpop.f32.mrf.mxu1  ;;  %3982 = vmatpush3.bf16.msra.mxu0 %v4120_v10 }
 0x1df   :  { %v1773_v2 = vadd.f32 %v1642_v0, %v694_v39  ;;  %3116 = vmatprep.mubr.bf16.mxu1 %v2217_v48  ;;  %v2153_v52 = vmax.f32 %v1766_v47, 0.0  ;;  %3983 = vmatprep.subr.bf16.mxu0 %v4121_v43 }
 0x1e0   :  { %v1644_v25 = vpop.f32.mrf.mxu1  ;;  %3117 = vmatmul.mubr.bf16.gmra.mxu1 %v2216_v46 }
 0x1e1   :  { %v2160_v20 = vmax.f32 %v1773_v2, 0.0  ;;  %v1774_v63 = vadd.f32 %v1644_v25, %v696_v50 }
 0x1e2   :  { %3984 = vmatpush3.bf16.msra.mxu0 %v4121_v43 }
 0x1e3   :  { %v2224_v32 = vpack.c.bf16 %v2160_v20, %v2152_v60  ;;  %v2161_v18 = vmax.f32 %v1774_v63, 0.0  ;;  %3985 = vmatprep.subr.bf16.mxu0 %v4122_v36 }
 0x1e5   :  { %v2225_v30 = vpack.c.bf16 %v2161_v18, %v2153_v52 }
 0x1e6   :  { %3986 = vmatpush3.bf16.msra.mxu0 %v4122_v36 }
 0x1e7   :  { %3124 = vmatprep.mubr.bf16.mxu1 %v2225_v30  ;;  %3987 = vmatprep.subr.bf16.mxu0 %v4123_v7 }
 0x1e8   :  { %3125 = vmatmul.mubr.bf16.gmra.mxu1 %v2224_v32 }
 0x1ea   :  { %3988 = vmatpush3.bf16.msra.mxu0 %v4123_v7 }
 0x1eb   :  { %3989 = vmatprep.subr.bf16.mxu0 %v4124_v9 }
 0x1ee   :  { %3990 = vmatpush3.bf16.msra.mxu0 %v4124_v9 }
 0x220   :  { %v3702_v40 = vpop.f32.mrf.mxu0 }
 0x222   :  { %v3703_v28 = vpop.f32.mrf.mxu0 }
 0x223   :  { %v3704_v1 = vadd.f32 %v3703_v28, %v3702_v40 }
 0x224   :  { %v5310_v45 = vpop.f32.mrf.mxu0 }
 0x225   :  { %v2780_v35 = vadd.f32 %v3704_v1, %v5321_v62 }
 0x226   :  { %v5312_v54 = vpop.f32.mrf.mxu0 }
 0x228   :  { %v3708_v11 = vpop.f32.mrf.mxu0 }
 0x22a   :  { %v3709_v27 = vpop.f32.mrf.mxu0 }
 0x22b   :  { %v3710_v14 = vadd.f32 %v3709_v27, %v3708_v11 }
 0x22c   :  { %v5314_v12 = vpop.f32.mrf.mxu0 }
 0x22d   :  { %v2788_v17 = vadd.f32 %v3710_v14, %v5321_v62 }
 0x22e   :  { %v5316_v53 = vpop.f32.mrf.mxu0 }
 0x230   :  { %v3766_v33 = vpop.f32.mrf.mxu1  ;;  %v3714_v31 = vpop.f32.mrf.mxu0 }
 0x232   :  { %v3767_v57 = vpop.f32.mrf.mxu1  ;;  %v3715_v51 = vpop.f32.mrf.mxu0 }
 0x233   :  { %v3768_v13 = vadd.f32 %v3767_v57, %v3766_v33  ;;  %v3716_v4 = vadd.f32 %v3715_v51, %v3714_v31 }
 0x234   :  { %v5324_v42 = vpop.f32.mrf.mxu1  ;;  %v5328_v38 = vpop.f32.mrf.mxu0 }
 0x235   :  { %v5326_v15 = vadd.f32 %v3768_v13, %v2780_v35  ;;  %v2796_v16 = vadd.f32 %v3716_v4, %v5321_v62 }
 0x236   :  { %v5330_v56 = vpop.f32.mrf.mxu1  ;;  %v5332_v34 = vpop.f32.mrf.mxu0 }
 0x238   :  { %v3772_v3 = vpop.f32.mrf.mxu1 }
 0x239   :  { %v3720_v49 = vpop.f32.mrf.mxu0 }
 0x23a   :  { %v3773_v5 = vpop.f32.mrf.mxu1 }
 0x23b   :  { %v3721_v23 = vpop.f32.mrf.mxu0  ;;  %v3774_v19 = vadd.f32 %v3773_v5, %v3772_v3 }
 0x23c   :  { %v3722_v26 = vadd.f32 %v3721_v23, %v3720_v49  ;;  %v5335_v58 = vpop.f32.mrf.mxu1 }
 0x23d   :  { %v5337_v37 = vadd.f32 %v3774_v19, %v2788_v17  ;;  %v5339_v8 = vpop.f32.mrf.mxu0 }
 0x23e   :  { %v5341_v29 = vpop.f32.mrf.mxu1  ;;  %v2804_v20 = vadd.f32 %v3722_v26, %v5321_v62 }
 0x23f   :  { %v5343_v22 = vpop.f32.mrf.mxu0 }
 0x240   :  { %v3778_v46 = vpop.f32.mrf.mxu1 }
 0x241   :  { %v3726_v55 = vpop.f32.mrf.mxu0 }
 0x242   :  { %v3779_v6 = vpop.f32.mrf.mxu1 }
 0x243   :  { %v3727_v44 = vpop.f32.mrf.mxu0  ;;  %v3780_v59 = vadd.f32 %v3779_v6, %v3778_v46 }
 0x244   :  { %v3728_v39 = vadd.f32 %v3727_v44, %v3726_v55  ;;  %v5346_v48 = vpop.f32.mrf.mxu1 }
 0x245   :  { %v5348_v24 = vadd.f32 %v3780_v59, %v2796_v16  ;;  %v5350_v0 = vpop.f32.mrf.mxu0 }
 0x246   :  { %v5352_v50 = vpop.f32.mrf.mxu1  ;;  %v2812_v7 = vadd.f32 %v3728_v39, %v5321_v62 }
 0x247   :  { %v5354_v47 = vpop.f32.mrf.mxu0 }
 0x248   :  { %v3784_v2 = vpop.f32.mrf.mxu1 }
 0x249   :  { %v3732_v25 = vpop.f32.mrf.mxu0 }
 0x24a   :  { %v3785_v60 = vpop.f32.mrf.mxu1 }
 0x24b   :  { %v3733_v63 = vpop.f32.mrf.mxu0  ;;  %v3786_v61 = vadd.f32 %v3785_v60, %v3784_v2 }
 0x24c   :  { %v3734_v52 = vadd.f32 %v3733_v63, %v3732_v25  ;;  %v5357_v32 = vpop.f32.mrf.mxu1 }
 0x24d   :  { %v5359_v18 = vadd.f32 %v3786_v61, %v2804_v20  ;;  %v5361_v30 = vpop.f32.mrf.mxu0 }
 0x24e   :  { %v5363_v21 = vpop.f32.mrf.mxu1  ;;  %v2820_v51 = vadd.f32 %v3734_v52, %v5321_v62 }
 0x24f   :  { %v5365_v41 = vpop.f32.mrf.mxu0 }
 0x250   :  { %v3790_v10 = vpop.f32.mrf.mxu1 }
 0x251   :  { %v3738_v43 = vpop.f32.mrf.mxu0 }
 0x252   :  { %v3791_v36 = vpop.f32.mrf.mxu1 }
 0x253   :  { %v3739_v9 = vpop.f32.mrf.mxu0  ;;  %v3792_v40 = vadd.f32 %v3791_v36, %v3790_v10 }
 0x254   :  { %v3740_v28 = vadd.f32 %v3739_v9, %v3738_v43  ;;  %v5368_v1 = vpop.f32.mrf.mxu1 }
 0x255   :  { %v5370_v11 = vadd.f32 %v3792_v40, %v2812_v7  ;;  %v5372_v27 = vpop.f32.mrf.mxu0 }
 0x256   :  { %v5374_v14 = vpop.f32.mrf.mxu1  ;;  %v2828_v6 = vadd.f32 %v3740_v28, %v5321_v62  ;;  %v3707_v28 = vadd.f32 %v5312_v54, %v5310_v45  ;;  %v3713_v45 = vadd.f32 %v5316_v53, %v5314_v12 }
 0x257   :  { %v5376_v33 = vpop.f32.mrf.mxu0 }
 0x258   :  { %v3796_v31 = vpop.f32.mrf.mxu1 }
 0x259   :  { %v3744_v57 = vpop.f32.mrf.mxu0 }
 0x25a   :  { %v3797_v35 = vpop.f32.mrf.mxu1 }
 0x25b   :  { %v3745_v13 = vpop.f32.mrf.mxu0  ;;  %v3798_v4 = vadd.f32 %v3797_v35, %v3796_v31  ;;  %v3771_v35 = vadd.f32 %v5330_v56, %v5324_v42 }
 0x25c   :  { %v3746_v3 = vadd.f32 %v3745_v13, %v3744_v57  ;;  %v5379_v49 = vpop.f32.mrf.mxu1 }
 0x25d   :  { %v5381_v5 = vadd.f32 %v3798_v4, %v2820_v51  ;;  %v5383_v17 = vpop.f32.mrf.mxu0 }
 0x25e   :  { %v5385_v23 = vpop.f32.mrf.mxu1  ;;  %v2836_v52 = vadd.f32 %v3746_v3, %v5321_v62  ;;  %v2783_v3 = vadd.f32 %v3707_v28, %v5321_v62 }
 0x25f   :  { %v5387_v19 = vpop.f32.mrf.mxu0 }
 0x260   :  { %v3802_v26 = vpop.f32.mrf.mxu1 }
 0x261   :  { %v3830_v46 = vpop.f32.mrf.mxu0 }
 0x262   :  { %v3803_v55 = vpop.f32.mrf.mxu1 }
 0x263   :  { %v3804_v16 = vadd.f32 %v3803_v55, %v3802_v26  ;;  %v3831_v44 = vpop.f32.mrf.mxu0 }
 0x264   :  { %v5390_v59 = vpop.f32.mrf.mxu1  ;;  %v3832_v51 = vadd.f32 %v3831_v44, %v3830_v46  ;;  %v3777_v44 = vadd.f32 %v5341_v29, %v5335_v58  ;;  %v3719_v58 = vadd.f32 %v5332_v34, %v5328_v38 }
 0x265   :  { %v5392_v39 = vadd.f32 %v3804_v16, %v2828_v6  ;;  %v3833_v2 = vpop.f32.mrf.mxu0 }
 0x266   :  { %v5394_v25 = vpop.f32.mrf.mxu1 }
 0x267   :  { %v3834_v60 = vpop.f32.mrf.mxu0 }
 0x268   :  { %v3808_v20 = vpop.f32.mrf.mxu1  ;;  %v3835_v26 = vadd.f32 %v3834_v60, %v3833_v2 }
 0x269   :  { %v3836_v63 = vpop.f32.mrf.mxu0 }
 0x26a   :  { %v3809_v61 = vpop.f32.mrf.mxu1 }
 0x26b   :  { %v3810_v10 = vadd.f32 %v3809_v61, %v3808_v20  ;;  %v3837_v43 = vpop.f32.mrf.mxu0  ;;  %v2880_v20 = vadd.f32 %v3771_v35, %v2783_v3  ;;  %v2974_v61 = vadd.f32 %v3832_v51, %v5326_v15 }
 0x26c   :  { %v5397_v36 = vpop.f32.mrf.mxu1  ;;  %v3838_v2 = vadd.f32 %v3837_v43, %v3836_v63 }
 0x26d   :  { %v5399_v7 = vadd.f32 %v3810_v10, %v2836_v52  ;;  %v3839_v9 = vpop.f32.mrf.mxu0  ;;  %v2977_v10 = vadd.f32 %v3835_v26, %v2880_v20 }
 0x26e   :  { %v5401_v40 = vpop.f32.mrf.mxu1 }
 0x26f   :  { %5684 = vst [vmem:[#allocation14_spill] sm:$0xff] %v5399_v7  ;;  %v3840_v31 = vpop.f32.mrf.mxu0 }
 0x270   :  { %v3894_v57 = vpop.f32.mrf.mxu1  ;;  %v3841_v15 = vadd.f32 %v3840_v31, %v3839_v9 }
 0x271   :  { %v3842_v13 = vpop.f32.mrf.mxu0 }
 0x272   :  { %v3895_v4 = vpop.f32.mrf.mxu1 }
 0x273   :  { %v3843_v55 = vpop.f32.mrf.mxu0  ;;  %v3896_v6 = vadd.f32 %v3895_v4, %v3894_v57  ;;  %v2791_v57 = vadd.f32 %v3713_v45, %v5321_v62 }
 0x274   :  { %v3897_v16 = vpop.f32.mrf.mxu1  ;;  %v3844_v31 = vadd.f32 %v3843_v55, %v3842_v13 }
 0x275   :  { %v3845_v52 = vpop.f32.mrf.mxu0  ;;  %v3071_v7 = vadd.f32 %v3896_v6, %v2974_v61  ;;  %v2888_v26 = vadd.f32 %v3777_v44, %v2791_v57  ;;  %v2982_v6 = vadd.f32 %v3838_v2, %v5337_v37  ;;  %v2799_v37 = vadd.f32 %v3719_v58, %v5321_v62 }
 0x276   :  { %v3898_v54 = vpop.f32.mrf.mxu1 }
 0x277   :  { %v3846_v42 = vpop.f32.mrf.mxu0  ;;  %v3899_v56 = vadd.f32 %v3898_v54, %v3897_v16  ;;  %v3133_v51 = vmax.f32 %v3071_v7, 0.0  ;;  %v2985_v63 = vadd.f32 %v3841_v15, %v2888_v26  ;;  %v3783_v7 = vadd.f32 %v5352_v50, %v5346_v48 }
 0x278   :  { %v3900_v46 = vpop.f32.mrf.mxu1  ;;  %v3725_v48 = vadd.f32 %v5343_v22, %v5339_v8 }
 0x279   :  { %v3074_v60 = vadd.f32 %v3899_v56, %v2977_v10  ;;  %v3848_v28 = vpop.f32.mrf.mxu0  ;;  %v2896_v57 = vadd.f32 %v3783_v7, %v2799_v37 }
 0x27a   :  { %v3901_v35 = vpop.f32.mrf.mxu1 }
 0x27b   :  { %v3134_v4 = vmax.f32 %v3074_v60, 0.0  ;;  %v3849_v3 = vpop.f32.mrf.mxu0  ;;  %v3902_v12 = vadd.f32 %v3901_v35, %v3900_v46  ;;  %v3847_v46 = vadd.f32 %v3846_v42, %v3845_v52  ;;  %v2990_v35 = vadd.f32 %v3844_v31, %v5348_v24 }
 0x27c   :  { %v3903_v53 = vpop.f32.mrf.mxu1  ;;  %v3789_v42 = vadd.f32 %v5363_v21, %v5357_v32  ;;  %v2807_v24 = vadd.f32 %v3725_v48, %v5321_v62  ;;  %v3731_v32 = vadd.f32 %v5354_v47, %v5350_v0 }
 0x27d   :  { %v3851_v16 = vpop.f32.mrf.mxu0  ;;  %v3149_v20 = vpack.c.bf16 %v3134_v4, %v3133_v51  ;;  %v3079_v43 = vadd.f32 %v3902_v12, %v2982_v6  ;;  %v2993_v13 = vadd.f32 %v3847_v46, %v2896_v57 }
 0x27e   :  { %v3904_v29 = vpop.f32.mrf.mxu1 }
 0x27f   :  { %v3852_v61 = vpop.f32.mrf.mxu0  ;;  %v3905_v45 = vadd.f32 %v3904_v29, %v3903_v53  ;;  %3991 = vmatprep.mubr.bf16.mxu0 %v3149_v20  ;;  %v3135_v44 = vmax.f32 %v3079_v43, 0.0  ;;  %v3850_v53 = vadd.f32 %v3849_v3, %v3848_v28 }
 0x280   :  { %v3906_v9 = vpop.f32.mrf.mxu1  ;;  %v3853_v58 = vadd.f32 %v3852_v61, %v3851_v16  ;;  %v3795_v61 = vadd.f32 %v5374_v14, %v5368_v1  ;;  %v3737_v1 = vadd.f32 %v5365_v41, %v5361_v30 }
 0x281   :  { %v3082_v54 = vadd.f32 %v3905_v45, %v2985_v63  ;;  %v3854_v10 = vpop.f32.mrf.mxu0  ;;  %v2904_v45 = vadd.f32 %v3789_v42, %v2807_v24 }
 0x282   :  { %v3907_v56 = vpop.f32.mrf.mxu1 }
 0x283   :  { %v3136_v2 = vmax.f32 %v3082_v54, 0.0  ;;  %v3855_v38 = vpop.f32.mrf.mxu0  ;;  %v3908_v34 = vadd.f32 %v3907_v56, %v3906_v9  ;;  %v2998_v9 = vadd.f32 %v3850_v53, %v5359_v18  ;;  %v3001_v28 = vadd.f32 %v3853_v58, %v2904_v45 }
 0x284   :  { %v3909_v60 = vpop.f32.mrf.mxu1  ;;  %v3856_v56 = vadd.f32 %v3855_v38, %v3854_v10  ;;  %v2815_v18 = vadd.f32 %v3731_v32, %v5321_v62  ;;  %v2823_v53 = vadd.f32 %v3737_v1, %v5321_v62 }
 0x285   :  { %v3150_v15 = vpack.c.bf16 %v3136_v2, %v3135_v44  ;;  %v3857_v51 = vpop.f32.mrf.mxu0  ;;  %v3087_v55 = vadd.f32 %v3908_v34, %v2990_v35 }
 0x286   :  { %v3910_v50 = vpop.f32.mrf.mxu1  ;;  %v3006_v48 = vadd.f32 %v3856_v56, %v5370_v11 }
 0x287   :  { %v3858_v4 = vpop.f32.mrf.mxu0  ;;  %v3911_v12 = vadd.f32 %v3910_v50, %v3909_v60  ;;  %3992 = vmatmul.mubr.bf16.vlgmr.msra.gmra.mxu0 %v3150_v15  ;;  %v3137_v29 = vmax.f32 %v3087_v55, 0.0  ;;  %v2912_v15 = vadd.f32 %v3795_v61, %v2815_v18 }
 0x288   :  { %v3912_v52 = vpop.f32.mrf.mxu1  ;;  %v3859_v34 = vadd.f32 %v3858_v4, %v3857_v51  ;;  %v3801_v4 = vadd.f32 %v5385_v23, %v5379_v49 }
 0x289   :  { %v3090_v26 = vadd.f32 %v3911_v12, %v2993_v13  ;;  %v3860_v6 = vpop.f32.mrf.mxu0 }
 0x28a   :  { %v3913_v20 = vpop.f32.mrf.mxu1  ;;  %v3009_v10 = vadd.f32 %v3859_v34, %v2912_v15 }
 0x28b   :  { %v3138_v63 = vmax.f32 %v3090_v26, 0.0  ;;  %v3861_v8 = vpop.f32.mrf.mxu0  ;;  %v3914_v22 = vadd.f32 %v3913_v20, %v3912_v52 }
 0x28c   :  { %v3915_v43 = vpop.f32.mrf.mxu1  ;;  %v3862_v52 = vadd.f32 %v3861_v8, %v3860_v6 }
 0x28d   :  { %v3863_v7 = vpop.f32.mrf.mxu0  ;;  %v3151_v31 = vpack.c.bf16 %v3138_v63, %v3137_v29  ;;  %v3095_v3 = vadd.f32 %v3914_v22, %v2998_v9  ;;  %v2920_v29 = vadd.f32 %v3801_v4, %v2823_v53 }
 0x28e   :  { %v3916_v21 = vpop.f32.mrf.mxu1  ;;  %v3014_v63 = vadd.f32 %v3862_v52, %v5381_v5 }
 0x28f   :  { %v3864_v54 = vpop.f32.mrf.mxu0  ;;  %v3917_v37 = vadd.f32 %v3916_v21, %v3915_v43  ;;  %3995 = vmatprep.mubr.bf16.mxu0 %v3151_v31  ;;  %v3139_v60 = vmax.f32 %v3095_v3, 0.0  ;;  %v3743_v43 = vadd.f32 %v5376_v33, %v5372_v27 }
 0x290   :  { %v3918_v16 = vpop.f32.mrf.mxu1  ;;  %v3865_v26 = vadd.f32 %v3864_v54, %v3863_v7  ;;  %v3807_v7 = vadd.f32 %v5394_v25, %v5390_v59 }
 0x291   :  { %v3098_v46 = vadd.f32 %v3917_v37, %v3001_v28  ;;  %v3866_v44 = vpop.f32.mrf.mxu0  ;;  %v2831_v21 = vadd.f32 %v3743_v43, %v5321_v62 }
 0x292   :  { %v3919_v2 = vpop.f32.mrf.mxu1  ;;  %v3017_v49 = vadd.f32 %v3865_v26, %v2920_v29 }
 0x293   :  { %v3140_v57 = vmax.f32 %v3098_v46, 0.0  ;;  %v3867_v0 = vpop.f32.mrf.mxu0  ;;  %v3920_v47 = vadd.f32 %v3919_v2, %v3918_v16  ;;  %v2928_v16 = vadd.f32 %v3807_v7, %v2831_v21  ;;  %v3749_v46 = vadd.f32 %v5387_v19, %v5383_v17 }
 0x294   :  { %v3921_v35 = vpop.f32.mrf.mxu1  ;;  %v3868_v31 = vadd.f32 %v3867_v0, %v3866_v44 }
 0x295   :  { %v3152_v50 = vpack.c.bf16 %v3140_v57, %v3139_v60  ;;  %v3869_v13 = vpop.f32.mrf.mxu0  ;;  %v3103_v38 = vadd.f32 %v3920_v47, %v3006_v48  ;;  %v3813_v60 = vadd.f32 %v5401_v40, %v5397_v36  ;;  %v2839_v47 = vadd.f32 %v3749_v46, %v5321_v62 }
 0x296   :  { %v3922_v14 = vpop.f32.mrf.mxu1  ;;  %v3022_v61 = vadd.f32 %v3868_v31, %v5392_v39  ;;  %v4173_v62 = vmov 0.0  }
 0x297   :  { %v3923_v55 = vadd.f32 %v3922_v14, %v3921_v35  ;;  %3996 = vmatmul.mubr.bf16.gmra.mxu0 %v3152_v50  ;;  %v3870_v12 = vpop.f32.mrf.mxu0  ;;  %v3141_v24 = vmax.f32 %v3103_v38, 0.0  ;;  %v2936_v19 = vadd.f32 %v3813_v60, %v2839_v47  ;;  %4007 = vmatprep.subr.mxu1 %v4173_v62 }
 0x298   :  { %v3924_v51 = vpop.f32.mrf.mxu1  ;;  %v3871_v5 = vadd.f32 %v3870_v12, %v3869_v13  ;;  %v5685_v13 = vld [vmem:[#allocation14_spill] sm:$0xff]  ;;  %4039 = vmatprep.mubr.msk.f32.mxu1 %vm4174_vm2, %v4173_v62 }
 0x299   :  { %v3106_v42 = vadd.f32 %v3923_v55, %v3009_v10  ;;  %v3872_v30 = vpop.f32.mrf.mxu0 }
 0x29a   :  { %v3925_v11 = vpop.f32.mrf.mxu1  ;;  %v3025_v59 = vadd.f32 %v3871_v5, %v2928_v16 }
 0x29b   :  { %v3142_v20 = vmax.f32 %v3106_v42, 0.0  ;;  %v3926_v58 = vadd.f32 %v3925_v11, %v3924_v51  ;;  %v3873_v8 = vpop.f32.mrf.mxu0 }
 0x29c   :  { %v3927_v41 = vpop.f32.mrf.mxu1  ;;  %v3874_v57 = vadd.f32 %v3873_v8, %v3872_v30 }
 0x29d   :  { %v3153_v22 = vpack.c.bf16 %v3142_v20, %v3141_v24  ;;  %v3111_v23 = vadd.f32 %v3926_v58, %v3014_v63  ;;  %v3875_v27 = vpop.f32.mrf.mxu0 }
 0x29e   :  { %v3928_v45 = vpop.f32.mrf.mxu1  ;;  %v3030_v1 = vadd.f32 %v3874_v57, %v5685_v13 }
 0x29f   :  { %v3929_v6 = vadd.f32 %v3928_v45, %v3927_v41  ;;  %3999 = vmatprep.mubr.bf16.mxu0 %v3153_v22  ;;  %v3143_v3 = vmax.f32 %v3111_v23, 0.0  ;;  %v3876_v2 = vpop.f32.mrf.mxu0  ;;  %v3660_v45 = vld [vmem:[%s5514_s8] ss:$0 sm:$0xff] }
 0x2a0   :  { %v3930_v9 = vpop.f32.mrf.mxu1  ;;  %v3877_v39 = vadd.f32 %v3876_v2, %v3875_v27 }
 0x2a1   :  { %v3114_v32 = vadd.f32 %v3929_v6, %v3017_v49 }
 0x2a2   :  { %v3931_v28 = vpop.f32.mrf.mxu1  ;;  %v3033_v38 = vadd.f32 %v3877_v39, %v2936_v19  ;;  %v3344_v19 = vstv %s5516_s10 }
 0x2a3   :  { %v3144_v54 = vmax.f32 %v3114_v32, 0.0  ;;  %v3932_v37 = vadd.f32 %v3931_v28, %v3930_v9 }
 0x2a4   :  { %v3933_v33 = vpop.f32.mrf.mxu1 }
 0x2a5   :  { %v3154_v56 = vpack.c.bf16 %v3144_v54, %v3143_v3  ;;  %v3119_v25 = vadd.f32 %v3932_v37, %v3022_v61 }
 0x2a6   :  { %v3934_v18 = vpop.f32.mrf.mxu1 }
 0x2a7   :  { %v3935_v44 = vadd.f32 %v3934_v18, %v3933_v33  ;;  %4000 = vmatmul.mubr.bf16.gmra.mxu0 %v3154_v56  ;;  %v3145_v15 = vmax.f32 %v3119_v25, 0.0 }
 0x2a8   :  { %v3936_v34 = vpop.f32.mrf.mxu1 }
 0x2a9   :  { %v3122_v0 = vadd.f32 %v3935_v44, %v3025_v59 }
 0x2aa   :  { %v3937_v35 = vpop.f32.mrf.mxu1 }
 0x2ab   :  { %v3146_v48 = vmax.f32 %v3122_v0, 0.0  ;;  %v3938_v50 = vadd.f32 %v3937_v35, %v3936_v34 }
 0x2ac   :  { %v3939_v17 = vpop.f32.mrf.mxu1 }
 0x2ad   :  { %v3155_v14 = vpack.c.bf16 %v3146_v48, %v3145_v15  ;;  %v3127_v55 = vadd.f32 %v3938_v50, %v3030_v1  ;;  %v3341_v48 = vld [vmem:[%s5515_s9] sm:$0x1]  ;;  %s4145_s9 = scalar_lea.vmem %s3475_s12, 16 }
 0x2ae   :  { %v3940_v10 = vpop.f32.mrf.mxu1  ;;  %p4146_p5 = scmp.ne.s32.totalorder %s3475_s12, %s4145_s9  ;;  %p4151_p7 = scmp.lt.s32.totalorder %s4149_s0, %s4145_s9 }
 0x2af   :  { %v3941_v12 = vadd.f32 %v3940_v10, %v3939_v17  ;;  %4003 = vmatprep.mubr.bf16.mxu0 %v3155_v14  ;;  %v3147_v40 = vmax.f32 %v3127_v55, 0.0  ;;  %v3342_v17 = vunpack.c.l.bf16 %v3341_v48 }
 0x2b0   :  { %p4152_p8 = por %p4151_p7, %p4150_p6 }
 0x2b1   :  { %v3130_v36 = vadd.f32 %v3941_v12, %v3033_v38 }
 0x2b2   :  { %p4153_p9 = pnand %p4152_p8, %p4146_p5 }
 0x2b3   :  { %v3148_v51 = vmax.f32 %v3130_v36, 0.0 }
 0x2b5   :  { %v3156_v4 = vpack.c.bf16 %v3148_v51, %v3147_v40 }
 0x2b7   :  { %4004 = vmatmul.mubr.bf16.gmra.mxu0 %v3156_v4 }
 0x347   :  { %v5453_v52 = vpop.f32.mrf.mxu0 }
 0x348   :  { %v3271_v57 = vadd.f32 %v5453_v52, %v3660_v45 }
 0x349   :  { %v5455_v42 = vpop.f32.mrf.mxu0 }
 0x34a   :  { %v3327_v47 = vmax.f32 %v3271_v57, 0.0  ;;  %v3263_v39 = vadd.f32 %v3660_v45, %v5455_v42 }
 0x34b   :  { %v3994_v53 = vpop.f32.mrf.mxu0 }
 0x34c   :  { %v3274_v34 = vadd.f32 %v3994_v53, %v3660_v45  ;;  %v3325_v50 = vmax.f32 %v3263_v39, 0.0 }
 0x34d   :  { %v5457_v11 = vpop.f32.mrf.mxu0 }
 0x34e   :  { %v3328_v0 = vmax.f32 %v3274_v34, 0.0  ;;  %v3266_v35 = vadd.f32 %v3660_v45, %v5457_v11 }
 0x350   :  { %v3326_v15 = vmax.f32 %v3266_v35, 0.0 }
 0x357   :  { %v3997_v26 = vpop.f32.mrf.mxu0 }
 0x358   :  { %v3287_v46 = vadd.f32 %v3997_v26, %v3660_v45 }
 0x359   :  { %v3278_v24 = vpop.f32.mrf.mxu0 }
 0x35a   :  { %v3331_v59 = vmax.f32 %v3287_v46, 0.0  ;;  %v3279_v44 = vadd.f32 %v3660_v45, %v3278_v24 }
 0x35b   :  { %v3998_v20 = vpop.f32.mrf.mxu0 }
 0x35c   :  { %v3290_v61 = vadd.f32 %v3998_v20, %v3660_v45  ;;  %v3329_v60 = vmax.f32 %v3279_v44, 0.0 }
 0x35d   :  { %v3281_v58 = vpop.f32.mrf.mxu0 }
 0x35e   :  { %v3332_v18 = vmax.f32 %v3290_v61, 0.0  ;;  %v3282_v25 = vadd.f32 %v3660_v45, %v3281_v58 }
 0x360   :  { %v3330_v2 = vmax.f32 %v3282_v25, 0.0 }
 0x367   :  { %v4001_v30 = vpop.f32.mrf.mxu0 }
 0x368   :  { %v3303_v3 = vadd.f32 %v4001_v30, %v3660_v45 }
 0x369   :  { %v3294_v41 = vpop.f32.mrf.mxu0 }
 0x36a   :  { %v3335_v37 = vmax.f32 %v3303_v3, 0.0  ;;  %v3295_v33 = vadd.f32 %v3660_v45, %v3294_v41 }
 0x36b   :  { %v4002_v29 = vpop.f32.mrf.mxu0 }
 0x36c   :  { %v3306_v28 = vadd.f32 %v4002_v29, %v3660_v45  ;;  %v3333_v56 = vmax.f32 %v3295_v33, 0.0 }
 0x36d   :  { %v3297_v63 = vpop.f32.mrf.mxu0 }
 0x36e   :  { %v3336_v54 = vmax.f32 %v3306_v28, 0.0  ;;  %v3298_v27 = vadd.f32 %v3660_v45, %v3297_v63 }
 0x370   :  { %v3334_v16 = vmax.f32 %v3298_v27, 0.0 }
 0x377   :  { %v4005_v22 = vpop.f32.mrf.mxu0 }
 0x378   :  { %v3319_v6 = vadd.f32 %v4005_v22, %v3660_v45 }
 0x379   :  { %v3310_v43 = vpop.f32.mrf.mxu0 }
 0x37a   :  { %v3339_v7 = vmax.f32 %v3319_v6, 0.0  ;;  %v3311_v32 = vadd.f32 %v3660_v45, %v3310_v43 }
 0x37b   :  { %v4006_v49 = vpop.f32.mrf.mxu0 }
 0x37c   :  { %v3322_v23 = vadd.f32 %v4006_v49, %v3660_v45  ;;  %v3337_v5 = vmax.f32 %v3311_v32, 0.0 }
 0x37d   :  { %v3313_v9 = vpop.f32.mrf.mxu0 }
 0x37e   :  { %v3340_v8 = vmax.f32 %v3322_v23, 0.0  ;;  %v3314_v31 = vadd.f32 %v3660_v45, %v3313_v9 }
 0x380   :  { %4008 = vmatpush3.xpose.msk.msra.mxu1 %vm3345_vm3, %v3340_v8  ;;  %v3338_v21 = vmax.f32 %v3314_v31, 0.0 }
 0x381   :  { %4009 = vmatprep.subr.mxu1 %v4173_v62 }
 0x384   :  { %4010 = vmatpush3.xpose.msk.msra.mxu1 %vm3345_vm3, %v3339_v7 }
 0x385   :  { %4011 = vmatprep.subr.mxu1 %v4173_v62 }
 0x388   :  { %4012 = vmatpush3.xpose.msk.msra.mxu1 %vm3345_vm3, %v3338_v21 }
 0x389   :  { %4013 = vmatprep.subr.mxu1 %v4173_v62 }
 0x38c   :  { %4014 = vmatpush3.xpose.msk.msra.mxu1 %vm3345_vm3, %v3337_v5 }
 0x38d   :  { %4015 = vmatprep.subr.mxu1 %v4173_v62 }
 0x390   :  { %4016 = vmatpush3.xpose.msk.msra.mxu1 %vm3345_vm3, %v3336_v54 }
 0x391   :  { %4017 = vmatprep.subr.mxu1 %v4173_v62 }
 0x394   :  { %4018 = vmatpush3.xpose.msk.msra.mxu1 %vm3345_vm3, %v3335_v37 }
 0x395   :  { %4019 = vmatprep.subr.mxu1 %v4173_v62 }
 0x398   :  { %4020 = vmatpush3.xpose.msk.msra.mxu1 %vm3345_vm3, %v3334_v16 }
 0x399   :  { %4021 = vmatprep.subr.mxu1 %v4173_v62 }
 0x39c   :  { %4022 = vmatpush3.xpose.msk.msra.mxu1 %vm3345_vm3, %v3333_v56 }
 0x39d   :  { %4023 = vmatprep.subr.mxu1 %v4173_v62 }
 0x3a0   :  { %4024 = vmatpush3.xpose.msk.msra.mxu1 %vm3345_vm3, %v3332_v18 }
 0x3a1   :  { %4025 = vmatprep.subr.mxu1 %v4173_v62 }
 0x3a4   :  { %4026 = vmatpush3.xpose.msk.msra.mxu1 %vm3345_vm3, %v3331_v59 }
 0x3a5   :  { %4027 = vmatprep.subr.mxu1 %v4173_v62 }
 0x3a8   :  { %4028 = vmatpush3.xpose.msk.msra.mxu1 %vm3345_vm3, %v3330_v2 }
 0x3a9   :  { %4029 = vmatprep.subr.mxu1 %v4173_v62 }
 0x3ac   :  { %4030 = vmatpush3.xpose.msk.msra.mxu1 %vm3345_vm3, %v3329_v60 }
 0x3ad   :  { %4031 = vmatprep.subr.mxu1 %v4173_v62 }
 0x3b0   :  { %4032 = vmatpush3.xpose.msk.msra.mxu1 %vm3345_vm3, %v3328_v0 }
 0x3b1   :  { %4033 = vmatprep.subr.mxu1 %v4173_v62 }
 0x3b4   :  { %4034 = vmatpush3.xpose.msk.msra.mxu1 %vm3345_vm3, %v3327_v47 }
 0x3b5   :  { %4035 = vmatprep.subr.mxu1 %v4173_v62 }
 0x3b8   :  { %4036 = vmatpush3.xpose.msk.msra.mxu1 %vm3345_vm3, %v3326_v15 }
 0x3b9   :  { %4037 = vmatprep.subr.mxu1 %v4173_v62 }
 0x3bc   :  { %4038 = vmatpush3.xpose.msk.msra.mxu1 %vm3345_vm3, %v3325_v50 }
 0x3bf   :  { %4040 = vmatmul.mubr.msk.f32.vlgmr.msra.gmra.mxu1 %vm3345_vm3, %v3342_v17 }
 0x47f   :  { %v3463_v13 = vpop.f32.mrf.mxu1 }
 0x480   :  { %v3464_v1 = vadd.f32 %v3463_v13, %v3344_v19 }
 0x481   :  { %v4041_v14 = vpop.f32.mrf.mxu1 }
 0x482   :  { %3467 = vst [vmem:[#allocation7] sm:$0x1] %v3464_v1 }
 0x483   :  { %4156 = shalt.err (!%p4153_p9)
}
 0x484   :  { %3477 = dma.vmem_to_hbm [thread:$0]  %s3475_s12, 16, %s5517_s11, [#allocation6]  }
 0x485   :  { %4167 = dma.done.wait [#allocation6], 16  }
 0x486   :  { %4168 = vsyncadd [#allocation6], 4294967280 }
 0x487   :  { %3481 = vsyncpa [#allocation5], 1 }
 0x488   :  { %3482 = vsyncpa [#allocation6], 1 }

</bundles_post_ra>
